<compile_context>
chip_gen: v6e
topology: v6e:2x2x1
jax: 0.10.0
libtpu: 0.0.40
codegen_flags: <defaults>
</compile_context>

<pallas_src>
import jax
import jax.numpy as jnp
from jax.experimental import pallas as pl
from jax.experimental.pallas import tpu as pltpu


def _round_up(x, m):
    return (x + m - 1) // m * m


def _largest_divisor_leq(n, cap):
    for d in range(min(n, cap), 0, -1):
        if n % d == 0:
            return d
    return 1


def _convlstm_kernel(p_ref, c_ref, w_ref, b_ref, h_out_ref, c_out_ref):
    # p_ref:     (BB, H*W, Kpad)   im2col patch slab, bf16
    # c_ref:     (BB, Hd, H*W)     current cell state, channel-major, f32
    # w_ref:     (Kpad, 4*Hd)      im2col weight matrix, bf16
    # b_ref:     (1, 4*Hd)         conv bias, f32
    # h_out_ref: (BB, Hd, H*W)     next hidden state (channel-major == NCHW)
    # c_out_ref: (BB, Hd, H*W)     next cell state   (channel-major), f32
    BB, HW, Kpad = p_ref.shape
    Hd = c_ref.shape[1]

    # One MXU matmul for the whole batch block: (BB*HW, Kpad) @ (Kpad, 4*Hd),
    # bf16 operands, f32 accumulation.  The leading-dim collapse is a
    # layout-preserving reshape (HW is a multiple of 8).
    conv = jnp.dot(p_ref[...].reshape(BB * HW, Kpad), w_ref[...],
                   preferred_element_type=jnp.float32)        # (BB*HW, 4*Hd)
    conv = jnp.maximum(conv + b_ref[...], 0.0)                # relu(conv + b)

    # Per image: one 2-D XLU transpose to channel-major, then gate math on
    # dense 256-lane rows.  The i/f/o vs g split is a sublane split, so the
    # sigmoid / tanh apply directly to row blocks (no lane mask needed) and
    # the outputs land directly in NCHW element order (no wrapper transposes).
    for b in range(BB):                                       # static unroll, BB small
        gt = conv[b * HW:(b + 1) * HW, :].T                   # (4*Hd, HW)
        ifo = 0.5 * jnp.tanh(0.5 * gt[:3 * Hd, :]) + 0.5      # sigmoid(x) = .5*(tanh(x/2)+1)
        g = jnp.tanh(gt[3 * Hd:, :])                          # (Hd, HW)
        i = ifo[:Hd, :]
        f = ifo[Hd:2 * Hd, :]
        o = ifo[2 * Hd:3 * Hd, :]

        c_cur = c_ref[b]                                      # (Hd, HW) f32
        c_next = f * c_cur + i * g
        h_next = o * jnp.tanh(c_next)

        h_out_ref[b] = h_next.astype(h_out_ref.dtype)
        c_out_ref[b] = c_next.astype(c_out_ref.dtype)


def conv_lstm_cell_forward(x_nchw, h_nchw, c_nchw, w_oihw, bias, *,
                           batch_block=None):
    """ConvLSTMCell.forward.  PyTorch NCHW in; returns (h_next, c_next) NCHW."""
    B, Cx, H, W = x_nchw.shape
    Hd = h_nchw.shape[1]
    C4, Cin, kh, kw = w_oihw.shape
    assert C4 == 4 * Hd and Cin == Cx + Hd
    assert kh % 2 == 1 and kw % 2 == 1, "odd kernel sizes only"
    ph, pw = kh // 2, kw // 2
    HW = H * W
    K = kh * kw * Cin
    # Pad the contraction dim to a multiple of 256: lane-aligned slab columns
    # and full-width MXU K passes on v6e/v7x (v5e only needs 128; the extra
    # zero-K is negligible MXU time at these sizes).
    Kpad = _round_up(K, 256)

    # ---- input glue (plain XLA): NCHW -> NHWC, concat, zero-pad, im2col slab.
    # TODO(synk): for a multi-step ConvLSTM keep x/h in NHWC and c in
    # channel-major f32 across timesteps (and emit h in bf16) so these
    # per-step transposes / casts disappear entirely.
    x = jnp.transpose(x_nchw, (0, 2, 3, 1))
    h = jnp.transpose(h_nchw, (0, 2, 3, 1))
    combined = jnp.concatenate([x, h], axis=-1).astype(jnp.bfloat16)
    cpad = jnp.pad(combined, ((0, 0), (ph, ph), (pw, pw), (0, 0)))
    taps = [cpad[:, dy:dy + H, dx:dx + W, :]
            for dy in range(kh) for dx in range(kw)]
    patches = jnp.concatenate(taps, axis=-1).reshape(B, HW, K)   # tap-major cols
    patches = jnp.pad(patches, ((0, 0), (0, 0), (0, Kpad - K)))

    # OIHW -> (kh, kw, Cin, 4*Hd) -> (K, 4*Hd): tap-major, channel-minor rows
    # matching the slab column order; zero rows for the K padding.
    w_mat = jnp.transpose(w_oihw, (2, 3, 1, 0)).reshape(K, 4 * Hd)
    w_mat = jnp.pad(w_mat.astype(jnp.bfloat16), ((0, Kpad - K), (0, 0)))
    bias2d = bias.reshape(1, 4 * Hd).astype(jnp.float32)
    c_in = c_nchw.reshape(B, Hd, HW).astype(jnp.float32)         # free NCHW reshape

    # ---- batch blocking: fold BB images into the matmul M dimension so a
    # single grid step does one big dot.  Keep the (double-buffered) working
    # set well under a conservative VMEM budget so the same plan fits v7x's
    # smaller 64 MiB VMEM.
    if batch_block is None:
        per_image = 2 * (HW * Kpad * 2 + Hd * HW * 4) + 2 * (2 * Hd * HW * 4)
        cap = max(1, (8 << 20) // max(per_image, 1))
        batch_block = _largest_divisor_leq(B, cap)
    BB = batch_block
    assert B % BB == 0
    # TODO(synk): on v7x (2 TensorCores) prefer BB <= B//2 so >=2 "parallel"
    # grid steps keep both cores busy when B allows it.

    grid_spec = pltpu.PrefetchScalarGridSpec(
        num_scalar_prefetch=0,
        grid=(B // BB,),
        in_specs=[
            pl.BlockSpec((BB, HW, Kpad), lambda b: (b, 0, 0)),
            pl.BlockSpec((BB, Hd, HW), lambda b: (b, 0, 0)),
            pl.BlockSpec((Kpad, 4 * Hd), lambda b: (0, 0)),
            pl.BlockSpec((1, 4 * Hd), lambda b: (0, 0)),
        ],
        out_specs=[
            pl.BlockSpec((BB, Hd, HW), lambda b: (b, 0, 0)),
            pl.BlockSpec((BB, Hd, HW), lambda b: (b, 0, 0)),
        ],
    )

    h_cm, c_cm = pl.pallas_call(
        _convlstm_kernel,
        out_shape=(jax.ShapeDtypeStruct((B, Hd, HW), x_nchw.dtype),
                   jax.ShapeDtypeStruct((B, Hd, HW), jnp.float32)),
        grid_spec=grid_spec,
        compiler_params=pltpu.CompilerParams(
            dimension_semantics=("parallel",),
            # Allow XLA to fold the slab construction into the pallas_call
            # input pipeline instead of materializing it in HBM first.
            allow_input_fusion=[True, False, False, False]),
    )(patches, c_in, w_mat, bias2d)

    # (B, Hd, H*W) channel-major is already NCHW element order: free reshapes.
    return h_cm.reshape(B, Hd, H, W), c_cm.reshape(B, Hd, H, W)


def _reference_forward(x, h, c, w_oihw, bias, operand_dtype=jnp.float32):
    """Pure-JAX reference matching the PyTorch module (NCHW).

    operand_dtype=bf16 mirrors the kernel's matmul operand rounding (with f32
    accumulation) so layout/indexing bugs can be checked with tight tolerance.
    """
    combined = jnp.concatenate([x, h], axis=1).astype(operand_dtype)
    conv = jax.lax.conv_general_dilated(
        combined, w_oihw.astype(operand_dtype),
        window_strides=(1, 1), padding="SAME",
        dimension_numbers=("NCHW", "OIHW", "NCHW"),
        preferred_element_type=jnp.float32)
    conv = jax.nn.relu(conv + bias[None, :, None, None])
    cc_i, cc_f, cc_o, cc_g = jnp.split(conv, 4, axis=1)
    i = jax.nn.sigmoid(cc_i)
    f = jax.nn.sigmoid(cc_f)
    o = jax.nn.sigmoid(cc_o)
    g = jnp.tanh(cc_g)
    c_next = f * c + i * g
    h_next = o * jnp.tanh(c_next)
    return h_next, c_next


if __name__ == "__main__":
    # Module hyper-params (small, consistent with the PyTorch __init__).
    B, input_dim, hidden_dim, H, W = 2, 4, 32, 16, 16
    kh, kw = 3, 3
    Cin = input_dim + hidden_dim

    key = jax.random.PRNGKey(0)
    kx, khh, kc, kww, kb = jax.random.split(key, 5)

    x = jax.random.normal(kx, (B, input_dim, H, W), jnp.float32)
    h_cur = jax.random.normal(khh, (B, hidden_dim, H, W), jnp.float32)
    c_cur = jax.random.normal(kc, (B, hidden_dim, H, W), jnp.float32)

    # Deterministic synthetic conv parameters (PyTorch shapes: OIHW + bias).
    w_oihw = 0.1 * jax.random.normal(kww, (4 * hidden_dim, Cin, kh, kw),
                                     jnp.float32)
    bias = 0.1 * jax.random.normal(kb, (4 * hidden_dim,), jnp.float32)

    h_next, c_next = conv_lstm_cell_forward(x, h_cur, c_cur, w_oihw, bias)
    jax.block_until_ready((h_next, c_next))

    # Tight check vs. a reference using the same bf16 operand rounding as the
    # kernel (isolates layout / indexing bugs from quantization effects).
    h_bf, c_bf = _reference_forward(x, h_cur, c_cur, w_oihw, bias,
                                    operand_dtype=jnp.bfloat16)
    assert jnp.allclose(h_next, h_bf, rtol=2e-3, atol=2e-3), \
        float(jnp.max(jnp.abs(h_next - h_bf)))
    assert jnp.allclose(c_next, c_bf, rtol=2e-3, atol=2e-3), \
        float(jnp.max(jnp.abs(c_next - c_bf)))

    # Sanity check vs. the full-f32 reference (loose: bf16 matmul operands).
    h_f32, c_f32 = _reference_forward(x, h_cur, c_cur, w_oihw, bias)
    assert jnp.allclose(h_next, h_f32, rtol=5e-2, atol=1e-1)
    assert jnp.allclose(c_next, c_f32, rtol=5e-2, atol=1e-1)

    print("KERNEL_OK")
</pallas_src>

<mosaic_0001>
module attributes {stable_mosaic.version = 11 : i64} {
  func.func @_convlstm_kernel(%arg0: i32, %arg1: memref<2x256x512xbf16, #tpu.memory_space<vmem>>, %arg2: memref<2x32x256xf32, #tpu.memory_space<vmem>>, %arg3: memref<512x128xbf16, #tpu.memory_space<vmem>>, %arg4: memref<1x128xf32, #tpu.memory_space<vmem>>, %arg5: memref<2x32x256xf32, #tpu.memory_space<vmem>>, %arg6: memref<2x32x256xf32, #tpu.memory_space<vmem>>) attributes {dimension_semantics = [#tpu.dimension_semantics<parallel>], iteration_bounds = array<i64: 1>, scalar_prefetch = 0 : i64, scratch_operands = 0 : i64, tpu.core_type = #tpu.core_type<tc>, window_params = [{transform_indices = @transform_0, window_bounds = array<i64: 2, 256, 512>}, {transform_indices = @transform_1, window_bounds = array<i64: 2, 32, 256>}, {pipeline_mode = #tpu.pipeline_mode<synchronous>, transform_indices = @transform_2, window_bounds = array<i64: 512, 128>}, {pipeline_mode = #tpu.pipeline_mode<synchronous>, transform_indices = @transform_3, window_bounds = array<i64: 1, 128>}, {transform_indices = @transform_4, window_bounds = array<i64: 2, 32, 256>}, {transform_indices = @transform_5, window_bounds = array<i64: 2, 32, 256>}]} {
    %c0 = arith.constant 0 : index
    %c0_0 = arith.constant 0 : index
    %c0_1 = arith.constant 0 : index
    %0 = vector.load %arg1[%c0, %c0_0, %c0_1] : memref<2x256x512xbf16, #tpu.memory_space<vmem>>, vector<2x256x512xbf16>
    %1 = vector.shape_cast %0 : vector<2x256x512xbf16> to vector<512x512xbf16>
    %c0_2 = arith.constant 0 : index
    %c0_3 = arith.constant 0 : index
    %2 = vector.load %arg3[%c0_2, %c0_3] : memref<512x128xbf16, #tpu.memory_space<vmem>>, vector<512x128xbf16>
    %cst = arith.constant dense<0.000000e+00> : vector<512x128xf32>
    %3 = tpu.matmul %1, %2, %cst {dimension_numbers = #tpu.dot_dimension_numbers<[1], [0], [0], [1], [0, 0, 1, 1], [], []>} : vector<512x512xbf16>, vector<512x128xbf16>, vector<512x128xf32> -> vector<512x128xf32>
    %c0_4 = arith.constant 0 : index
    %c0_5 = arith.constant 0 : index
    %4 = vector.load %arg4[%c0_4, %c0_5] : memref<1x128xf32, #tpu.memory_space<vmem>>, vector<1x128xf32>
    %5 = vector.broadcast %4 : vector<1x128xf32> to vector<512x128xf32>
    %6 = arith.addf %3, %5 : vector<512x128xf32>
    %cst_6 = arith.constant 0.000000e+00 : f32
    %7 = vector.broadcast %cst_6 : f32 to vector<512x128xf32>
    %8 = arith.maximumf %6, %7 : vector<512x128xf32>
    %9 = vector.extract_strided_slice %8 {offsets = [0, 0], sizes = [256, 128], strides = [1, 1]} : vector<512x128xf32> to vector<256x128xf32>
    %10 = tpu.transpose %9, [1, 0] : vector<256x128xf32> -> vector<128x256xf32>
    %11 = vector.extract_strided_slice %10 {offsets = [0, 0], sizes = [96, 256], strides = [1, 1]} : vector<128x256xf32> to vector<96x256xf32>
    %cst_7 = arith.constant 5.000000e-01 : f32
    %12 = vector.broadcast %cst_7 : f32 to vector<96x256xf32>
    %13 = arith.mulf %12, %11 : vector<96x256xf32>
    %14 = math.tanh %13 : vector<96x256xf32>
    %cst_8 = arith.constant 5.000000e-01 : f32
    %15 = vector.broadcast %cst_8 : f32 to vector<96x256xf32>
    %16 = arith.mulf %15, %14 : vector<96x256xf32>
    %cst_9 = arith.constant 5.000000e-01 : f32
    %17 = vector.broadcast %cst_9 : f32 to vector<96x256xf32>
    %18 = arith.addf %16, %17 : vector<96x256xf32>
    %19 = vector.extract_strided_slice %10 {offsets = [96, 0], sizes = [32, 256], strides = [1, 1]} : vector<128x256xf32> to vector<32x256xf32>
    %20 = math.tanh %19 : vector<32x256xf32>
    %21 = vector.extract_strided_slice %18 {offsets = [0, 0], sizes = [32, 256], strides = [1, 1]} : vector<96x256xf32> to vector<32x256xf32>
    %22 = vector.extract_strided_slice %18 {offsets = [32, 0], sizes = [32, 256], strides = [1, 1]} : vector<96x256xf32> to vector<32x256xf32>
    %23 = vector.extract_strided_slice %18 {offsets = [64, 0], sizes = [32, 256], strides = [1, 1]} : vector<96x256xf32> to vector<32x256xf32>
    %c0_10 = arith.constant 0 : index
    %c0_11 = arith.constant 0 : index
    %c0_12 = arith.constant 0 : index
    %24 = vector.load %arg2[%c0_10, %c0_11, %c0_12] : memref<2x32x256xf32, #tpu.memory_space<vmem>>, vector<1x32x256xf32>
    %25 = vector.shape_cast %24 : vector<1x32x256xf32> to vector<32x256xf32>
    %26 = arith.mulf %22, %25 : vector<32x256xf32>
    %27 = arith.mulf %21, %20 : vector<32x256xf32>
    %28 = arith.addf %26, %27 : vector<32x256xf32>
    %29 = math.tanh %28 : vector<32x256xf32>
    %30 = arith.mulf %23, %29 : vector<32x256xf32>
    %c0_13 = arith.constant 0 : index
    %c0_14 = arith.constant 0 : index
    %c0_15 = arith.constant 0 : index
    %31 = vector.load %arg5[%c0_13, %c0_14, %c0_15] : memref<2x32x256xf32, #tpu.memory_space<vmem>>, vector<1x32x256xf32>
    %32 = vector.shape_cast %31 : vector<1x32x256xf32> to vector<32x256xf32>
    %33 = vector.shape_cast %30 : vector<32x256xf32> to vector<1x32x256xf32>
    tpu.vector_store %arg5[%c0_13, %c0_14, %c0_15], %33 {strides = array<i32>} : memref<2x32x256xf32, #tpu.memory_space<vmem>>, vector<1x32x256xf32>,
    %c0_16 = arith.constant 0 : index
    %c0_17 = arith.constant 0 : index
    %c0_18 = arith.constant 0 : index
    %34 = vector.load %arg6[%c0_16, %c0_17, %c0_18] : memref<2x32x256xf32, #tpu.memory_space<vmem>>, vector<1x32x256xf32>
    %35 = vector.shape_cast %34 : vector<1x32x256xf32> to vector<32x256xf32>
    %36 = vector.shape_cast %28 : vector<32x256xf32> to vector<1x32x256xf32>
    tpu.vector_store %arg6[%c0_16, %c0_17, %c0_18], %36 {strides = array<i32>} : memref<2x32x256xf32, #tpu.memory_space<vmem>>, vector<1x32x256xf32>,
    %37 = vector.extract_strided_slice %8 {offsets = [256, 0], sizes = [256, 128], strides = [1, 1]} : vector<512x128xf32> to vector<256x128xf32>
    %38 = tpu.transpose %37, [1, 0] : vector<256x128xf32> -> vector<128x256xf32>
    %39 = vector.extract_strided_slice %38 {offsets = [0, 0], sizes = [96, 256], strides = [1, 1]} : vector<128x256xf32> to vector<96x256xf32>
    %cst_19 = arith.constant 5.000000e-01 : f32
    %40 = vector.broadcast %cst_19 : f32 to vector<96x256xf32>
    %41 = arith.mulf %40, %39 : vector<96x256xf32>
    %42 = math.tanh %41 : vector<96x256xf32>
    %cst_20 = arith.constant 5.000000e-01 : f32
    %43 = vector.broadcast %cst_20 : f32 to vector<96x256xf32>
    %44 = arith.mulf %43, %42 : vector<96x256xf32>
    %cst_21 = arith.constant 5.000000e-01 : f32
    %45 = vector.broadcast %cst_21 : f32 to vector<96x256xf32>
    %46 = arith.addf %44, %45 : vector<96x256xf32>
    %47 = vector.extract_strided_slice %38 {offsets = [96, 0], sizes = [32, 256], strides = [1, 1]} : vector<128x256xf32> to vector<32x256xf32>
    %48 = math.tanh %47 : vector<32x256xf32>
    %49 = vector.extract_strided_slice %46 {offsets = [0, 0], sizes = [32, 256], strides = [1, 1]} : vector<96x256xf32> to vector<32x256xf32>
    %50 = vector.extract_strided_slice %46 {offsets = [32, 0], sizes = [32, 256], strides = [1, 1]} : vector<96x256xf32> to vector<32x256xf32>
    %51 = vector.extract_strided_slice %46 {offsets = [64, 0], sizes = [32, 256], strides = [1, 1]} : vector<96x256xf32> to vector<32x256xf32>
    %c1 = arith.constant 1 : index
    %c0_22 = arith.constant 0 : index
    %c0_23 = arith.constant 0 : index
    %52 = vector.load %arg2[%c1, %c0_22, %c0_23] : memref<2x32x256xf32, #tpu.memory_space<vmem>>, vector<1x32x256xf32>
    %53 = vector.shape_cast %52 : vector<1x32x256xf32> to vector<32x256xf32>
    %54 = arith.mulf %50, %53 : vector<32x256xf32>
    %55 = arith.mulf %49, %48 : vector<32x256xf32>
    %56 = arith.addf %54, %55 : vector<32x256xf32>
    %57 = math.tanh %56 : vector<32x256xf32>
    %58 = arith.mulf %51, %57 : vector<32x256xf32>
    %c1_24 = arith.constant 1 : index
    %c0_25 = arith.constant 0 : index
    %c0_26 = arith.constant 0 : index
    %59 = vector.load %arg5[%c1_24, %c0_25, %c0_26] : memref<2x32x256xf32, #tpu.memory_space<vmem>>, vector<1x32x256xf32>
    %60 = vector.shape_cast %59 : vector<1x32x256xf32> to vector<32x256xf32>
    %61 = vector.shape_cast %58 : vector<32x256xf32> to vector<1x32x256xf32>
    tpu.vector_store %arg5[%c1_24, %c0_25, %c0_26], %61 {strides = array<i32>} : memref<2x32x256xf32, #tpu.memory_space<vmem>>, vector<1x32x256xf32>,
    %c1_27 = arith.constant 1 : index
    %c0_28 = arith.constant 0 : index
    %c0_29 = arith.constant 0 : index
    %62 = vector.load %arg6[%c1_27, %c0_28, %c0_29] : memref<2x32x256xf32, #tpu.memory_space<vmem>>, vector<1x32x256xf32>
    %63 = vector.shape_cast %62 : vector<1x32x256xf32> to vector<32x256xf32>
    %64 = vector.shape_cast %56 : vector<32x256xf32> to vector<1x32x256xf32>
    tpu.vector_store %arg6[%c1_27, %c0_28, %c0_29], %64 {strides = array<i32>} : memref<2x32x256xf32, #tpu.memory_space<vmem>>, vector<1x32x256xf32>,
    return
  }
  func.func @transform_0(%arg0: i32) -> (i32, i32, i32) {
    %c0_i32 = arith.constant 0 : i32
    %c0_i32_0 = arith.constant 0 : i32
    %c0_i32_1 = arith.constant 0 : i32
    return %arg0, %c0_i32, %c0_i32_0 : i32, i32, i32
  }
  func.func @transform_1(%arg0: i32) -> (i32, i32, i32) {
    %c0_i32 = arith.constant 0 : i32
    %c0_i32_0 = arith.constant 0 : i32
    %c0_i32_1 = arith.constant 0 : i32
    return %arg0, %c0_i32, %c0_i32_0 : i32, i32, i32
  }
  func.func @transform_2(%arg0: i32) -> (i32, i32) {
    %c0_i32 = arith.constant 0 : i32
    %c0_i32_0 = arith.constant 0 : i32
    %c0_i32_1 = arith.constant 0 : i32
    return %c0_i32, %c0_i32_0 : i32, i32
  }
  func.func @transform_3(%arg0: i32) -> (i32, i32) {
    %c0_i32 = arith.constant 0 : i32
    %c0_i32_0 = arith.constant 0 : i32
    %c0_i32_1 = arith.constant 0 : i32
    return %c0_i32, %c0_i32_0 : i32, i32
  }
  func.func @transform_4(%arg0: i32) -> (i32, i32, i32) {
    %c0_i32 = arith.constant 0 : i32
    %c0_i32_0 = arith.constant 0 : i32
    %c0_i32_1 = arith.constant 0 : i32
    return %arg0, %c0_i32, %c0_i32_0 : i32, i32, i32
  }
  func.func @transform_5(%arg0: i32) -> (i32, i32, i32) {
    %c0_i32 = arith.constant 0 : i32
    %c0_i32_0 = arith.constant 0 : i32
    %c0_i32_1 = arith.constant 0 : i32
    return %arg0, %c0_i32, %c0_i32_0 : i32, i32, i32
  }
}

</mosaic_0001>

<bundles_post_ra>
// kernel: tpu_custom_call.1
= control target key start
LH: loop header
LB: loop body
LE: loop exit
PB: predicated region body
PF: predicated region fallthrough
CT: control target
= control target key end

     0   :  { %11 = vsyncpa [#allocation3], 0  ;;  %s3128_s0 = inlined_call_operand.hbm [shape: bf16[2,256,512], index: 0, kind: input, shape index: {}]   ;;  %s3129_s1 = inlined_call_operand.hbm [shape: f32[2,32,256], index: 1, kind: input, shape index: {}]   ;;  %s3130_s2 = inlined_call_operand.hbm [shape: bf16[512,128], index: 2, kind: input, shape index: {}]   ;;  %s3131_s3 = inlined_call_operand.vmem [shape: f32[1,128], index: 3, kind: input, shape index: {}]   ;;  %s3132_s4 = inlined_call_operand.hbm [shape: f32[2,32,256], index: 4, kind: output, shape index: {0}]   ;;  %s3133_s5 = inlined_call_operand.hbm [shape: f32[2,32,256], index: 5, kind: output, shape index: {1}]  }
   0x1   :  { %12 = vsyncpa [#allocation6], 0 }
   0x2   :  { %13 = vsyncpa [#allocation4], 0 }
   0x3   :  { %14 = vsyncpa [#allocation10], 0  ;;  %s2901_s18 = smov [#allocation5]   ;;  %s2902_s20 = smov [#allocation2]  }
   0x4   :  { %s32_s19 = sshll.u32 %s2901_s18, 4  ;;  %s20_s21 = sshll.u32 %s2902_s20, 4  ;;  %s33_s19 = int_to_ptr.vmem [resolvable:$true] %s32_s19  ;;  %s21_s21 = int_to_ptr.vmem [resolvable:$true] %s20_s21 }
   0x5   :  { %s2801_s22 = scalar_lea.vmem %s33_s19, 2048  ;;  %p2806_p1 = scmp.lt.s32.totalorder %s33_s19, %s33_s19 }
   0x6   :  { %p2802_p0 = scmp.ne.s32.totalorder %s33_s19, %s2801_s22  ;;  %p2807_p2 = scmp.lt.s32.totalorder %s2801_s22, %s2801_s22 }
   0x8   :  { %p2808_p3 = por %p2807_p2, %p2806_p1 }
   0xa   :  { %p2809_p4 = pnand %p2808_p3, %p2802_p0 }
   0xc   :  { %2812 = shalt.err (!%p2809_p4)
}
   0xd   :  { %s2903_s23 = smov 256   ;;  %s2904_s24 = smov 16  }
   0xe   :  { %38 = dma.hbm_to_vmem [thread:$0]  %s3129_s1, 2048, %s33_s19, [#allocation6], %s2903_s23, %s2903_s23, %s2904_s24  }
   0xf   :  { %s2821_s27 = scalar_lea.vmem %s21_s21, 16384  ;;  %p2826_p6 = scmp.lt.s32.totalorder %s21_s21, %s21_s21 }
  0x10   :  { %p2822_p5 = scmp.ne.s32.totalorder %s21_s21, %s2821_s27  ;;  %p2827_p7 = scmp.lt.s32.totalorder %s2821_s27, %s2821_s27 }
  0x12   :  { %p2828_p8 = por %p2827_p7, %p2826_p6 }
  0x14   :  { %p2829_p9 = pnand %p2828_p8, %p2822_p5 }
  0x16   :  { %2832 = shalt.err (!%p2829_p9)
}
  0x17   :  { %26 = dma.hbm_to_vmem [thread:$0]  %s3128_s0, 16384, %s21_s21, [#allocation3], %s2903_s23, %s2903_s23, %s2904_s24  }
  0x18   :  { %s2905_s30 = smov [#allocation7]  }
  0x19   :  { %s44_s6 = sshll.u32 %s2905_s30, 4  ;;  %s45_s6 = int_to_ptr.vmem [resolvable:$true] %s44_s6 }
  0x1a   :  { %s2841_s7 = scalar_lea.vmem %s45_s6, 4096  ;;  %p2846_p11 = scmp.lt.s32.totalorder %s45_s6, %s45_s6 }
  0x1b   :  { %p2842_p10 = scmp.ne.s32.totalorder %s45_s6, %s2841_s7  ;;  %p2847_p12 = scmp.lt.s32.totalorder %s2841_s7, %s2841_s7 }
  0x1d   :  { %p2848_p13 = por %p2847_p12, %p2846_p11 }
  0x1f   :  { %p2849_p0 = pnand %p2848_p13, %p2842_p10 }
  0x21   :  { %2852 = shalt.err (!%p2849_p0)
}
  0x22   :  { %s2906_s1 = smov 64   ;;  %s2907_s8 = smov 4  }
  0x23   :  { %50 = dma.hbm_to_vmem [thread:$0]  %s3130_s2, 4096, %s45_s6, [#allocation6], %s2906_s1, %s2906_s1, %s2907_s8  }
  0x24   :  { %2893 = dma.done.wait [#allocation3], 16384  }
  0x25   :  { %2894 = vsyncadd [#allocation3], 4294950912 }
  0x26   :  { %2895 = dma.done.wait [#allocation6], 6144  }
  0x27   :  { %2896 = vsyncadd [#allocation6], 4294961152  ;;  %v2908_v0 = vmov 0   ;;  %v2408_v1 = vld [vmem:[#allocation7 + $0x38] sm:$0xff]   ;;  %v2410_v3 = vld [vmem:[#allocation7 + $0x30] sm:$0xff]  }
  0x28   :  { %1094 = vmatprep.subr.bf16.mxu0 %v2908_v0  ;;  %1383 = vmatprep.subr.bf16.mxu1 %v2908_v0  ;;  %v2409_v2 = vld [vmem:[#allocation7 + $0xb8] sm:$0xff]   ;;  %v2411_v4 = vld [vmem:[#allocation7 + $0xb0] sm:$0xff]   ;;  %v2412_v5 = vld [vmem:[#allocation7 + $0x28] sm:$0xff]  }
  0x29   :  { %1095 = vmatpush1.bf16.msra.mxu0 %v2408_v1  ;;  %1384 = vmatpush1.bf16.msra.mxu1 %v2409_v2  ;;  %v2413_v6 = vld [vmem:[#allocation7 + $0xa8] sm:$0xff]   ;;  %v2414_v7 = vld [vmem:[#allocation7 + $0x20] sm:$0xff]   ;;  %v2416_v9 = vld [vmem:[#allocation7 + $0x18] sm:$0xff]  }
  0x2a   :  { %1096 = vmatprep.subr.bf16.mxu0 %v2908_v0  ;;  %1385 = vmatprep.subr.bf16.mxu1 %v2908_v0  ;;  %v2415_v8 = vld [vmem:[#allocation7 + $0xa0] sm:$0xff]   ;;  %v2417_v10 = vld [vmem:[#allocation7 + $0x98] sm:$0xff]   ;;  %v2418_v11 = vld [vmem:[#allocation7 + $0x10] sm:$0xff]  }
  0x2b   :  { %v2419_v12 = vld [vmem:[#allocation7 + $0x90] sm:$0xff]   ;;  %v2420_v13 = vld [vmem:[#allocation7 + $0x8] sm:$0xff]   ;;  %v2422_v15 = vld [vmem:[#allocation7] sm:$0xff]  }
  0x2c   :  { %v2421_v14 = vld [vmem:[#allocation7 + $0x88] sm:$0xff]   ;;  %v2423_v16 = vld [vmem:[#allocation7 + $0x80] sm:$0xff]   ;;  %v2424_v17 = vld [vmem:[#allocation7 + $0x78] sm:$0xff]  }
  0x2d   :  { %1097 = vmatpush1.bf16.msra.mxu0 %v2410_v3  ;;  %1386 = vmatpush1.bf16.msra.mxu1 %v2411_v4  ;;  %v2425_v18 = vld [vmem:[#allocation7 + $0xf8] sm:$0xff]   ;;  %v2442_v19 = vld [vmem:[#allocation2 + $0x4] ss:$16 sps:$4 sm:$0xff]   ;;  %v2428_v23 = vld [vmem:[#allocation7 + $0x68] sm:$0xff]  }
  0x2e   :  { %1098 = vmatprep.subr.bf16.mxu0 %v2908_v0  ;;  %1387 = vmatprep.subr.bf16.mxu1 %v2908_v0  ;;  %v2426_v20 = vld [vmem:[#allocation7 + $0x70] sm:$0xff]   ;;  %v2445_v21 = vld [vmem:[#allocation2 + $0xc] ss:$16 sps:$4 sm:$0xff]   ;;  %v2430_v25 = vld [vmem:[#allocation7 + $0x60] sm:$0xff]  }
  0x2f   :  { %v2427_v22 = vld [vmem:[#allocation7 + $0xf0] sm:$0xff]   ;;  %1126 = vmatprep.mubr.bf16.mxu0 %v2442_v19  ;;  %1415 = vmatprep.mubr.bf16.mxu1 %v2445_v21  ;;  %v2429_v24 = vld [vmem:[#allocation7 + $0xe8] sm:$0xff]   ;;  %v2431_v26 = vld [vmem:[#allocation7 + $0xe0] sm:$0xff]  }
  0x30   :  { %v2432_v27 = vld [vmem:[#allocation7 + $0x58] sm:$0xff]   ;;  %v2434_v29 = vld [vmem:[#allocation7 + $0x50] sm:$0xff]   ;;  %v2436_v31 = vld [vmem:[#allocation7 + $0x48] sm:$0xff]  }
  0x31   :  { %1099 = vmatpush1.bf16.msra.mxu0 %v2412_v5  ;;  %1388 = vmatpush1.bf16.msra.mxu1 %v2413_v6  ;;  %v2433_v28 = vld [vmem:[#allocation7 + $0xd8] sm:$0xff]   ;;  %v2435_v30 = vld [vmem:[#allocation7 + $0xd0] sm:$0xff]   ;;  %v2437_v32 = vld [vmem:[#allocation7 + $0xc8] sm:$0xff]  }
  0x32   :  { %1100 = vmatprep.subr.bf16.mxu0 %v2908_v0  ;;  %1389 = vmatprep.subr.bf16.mxu1 %v2908_v0  ;;  %v2438_v33 = vld [vmem:[#allocation7 + $0x40] sm:$0xff]   ;;  %v2443_v36 = vld [vmem:[#allocation2 + $0x8] ss:$16 sps:$4 sm:$0xff]   ;;  %v2448_v38 = vld [vmem:[#allocation2 + $0x2c] ss:$16 sps:$4 sm:$0xff]  }
  0x33   :  { %v2439_v34 = vld [vmem:[#allocation7 + $0xc0] sm:$0xff]   ;;  %v2451_v40 = vld [vmem:[#allocation2 + $0x28] ss:$16 sps:$4 sm:$0xff]   ;;  %v2454_v42 = vld [vmem:[#allocation2 + $0x4c] ss:$16 sps:$4 sm:$0xff]  }
  0x34   :  { %v2440_v35 = vld [vmem:[#allocation2] ss:$16 sps:$4 sm:$0xff]   ;;  %v2446_v37 = vld [vmem:[#allocation2 + $0x24] ss:$16 sps:$4 sm:$0xff]   ;;  %v2457_v44 = vld [vmem:[#allocation2 + $0x48] ss:$16 sps:$4 sm:$0xff]  }
  0x35   :  { %1101 = vmatpush1.bf16.msra.mxu0 %v2414_v7  ;;  %1390 = vmatpush1.bf16.msra.mxu1 %v2415_v8  ;;  %v2450_v39 = vld [vmem:[#allocation2 + $0x20] ss:$16 sps:$4 sm:$0xff]   ;;  %v2452_v41 = vld [vmem:[#allocation2 + $0x44] ss:$16 sps:$4 sm:$0xff]   ;;  %v2460_v46 = vld [vmem:[#allocation2 + $0x6c] ss:$16 sps:$4 sm:$0xff]  }
  0x36   :  { %1102 = vmatprep.subr.bf16.mxu0 %v2908_v0  ;;  %1391 = vmatprep.subr.bf16.mxu1 %v2908_v0  ;;  %v2456_v43 = vld [vmem:[#allocation2 + $0x40] ss:$16 sps:$4 sm:$0xff]   ;;  %v2458_v45 = vld [vmem:[#allocation2 + $0x64] ss:$16 sps:$4 sm:$0xff]   ;;  %v2463_v48 = vld [vmem:[#allocation2 + $0x68] ss:$16 sps:$4 sm:$0xff]  }
  0x37   :  { %v2462_v47 = vld [vmem:[#allocation2 + $0x60] ss:$16 sps:$4 sm:$0xff]   ;;  %v2464_v49 = vld [vmem:[#allocation2 + $0x84] ss:$16 sps:$4 sm:$0xff]   ;;  %v2466_v50 = vld [vmem:[#allocation2 + $0x8c] ss:$16 sps:$4 sm:$0xff]  }
  0x38   :  { %v2468_v51 = vld [vmem:[#allocation2 + $0x80] ss:$16 sps:$4 sm:$0xff]   ;;  %v2469_v52 = vld [vmem:[#allocation2 + $0x88] ss:$16 sps:$4 sm:$0xff]   ;;  %v2470_v53 = vld [vmem:[#allocation2 + $0xa4] ss:$16 sps:$4 sm:$0xff]  }
  0x39   :  { %1103 = vmatpush1.bf16.msra.mxu0 %v2416_v9  ;;  %1392 = vmatpush1.bf16.msra.mxu1 %v2417_v10  ;;  %v2472_v54 = vld [vmem:[#allocation2 + $0xac] ss:$16 sps:$4 sm:$0xff]   ;;  %v2474_v55 = vld [vmem:[#allocation2 + $0xa0] ss:$16 sps:$4 sm:$0xff]   ;;  %v2475_v56 = vld [vmem:[#allocation2 + $0xa8] ss:$16 sps:$4 sm:$0xff]  }
  0x3a   :  { %1104 = vmatprep.subr.bf16.mxu0 %v2908_v0  ;;  %1393 = vmatprep.subr.bf16.mxu1 %v2908_v0  ;;  %v2476_v57 = vld [vmem:[#allocation2 + $0xc4] ss:$16 sps:$4 sm:$0xff]   ;;  %v2478_v58 = vld [vmem:[#allocation2 + $0xcc] ss:$16 sps:$4 sm:$0xff]   ;;  %v2480_v59 = vld [vmem:[#allocation2 + $0xc0] ss:$16 sps:$4 sm:$0xff]  }
  0x3b   :  { %v2481_v60 = vld [vmem:[#allocation2 + $0xc8] ss:$16 sps:$4 sm:$0xff]   ;;  %v2482_v61 = vld [vmem:[#allocation2 + $0xe4] ss:$16 sps:$4 sm:$0xff]   ;;  %v2484_v62 = vld [vmem:[#allocation2 + $0xec] ss:$16 sps:$4 sm:$0xff]  }
  0x3c   :  { %v2486_v63 = vld [vmem:[#allocation2 + $0xe0] ss:$16 sps:$4 sm:$0xff]   ;;  %v2488_v1 = vld [vmem:[#allocation2 + $0x104] ss:$16 sps:$4 sm:$0xff]   ;;  %v2490_v2 = vld [vmem:[#allocation2 + $0x10c] ss:$16 sps:$4 sm:$0xff]  }
  0x3d   :  { %1105 = vmatpush1.bf16.msra.mxu0 %v2418_v11  ;;  %1394 = vmatpush1.bf16.msra.mxu1 %v2419_v12  ;;  %v2492_v3 = vld [vmem:[#allocation2 + $0x100] ss:$16 sps:$4 sm:$0xff]   ;;  %v2493_v4 = vld [vmem:[#allocation2 + $0x108] ss:$16 sps:$4 sm:$0xff]   ;;  %v2494_v5 = vld [vmem:[#allocation2 + $0x124] ss:$16 sps:$4 sm:$0xff]  }
  0x3e   :  { %1106 = vmatprep.subr.bf16.mxu0 %v2908_v0  ;;  %1395 = vmatprep.subr.bf16.mxu1 %v2908_v0  ;;  %v2496_v6 = vld [vmem:[#allocation2 + $0x12c] ss:$16 sps:$4 sm:$0xff]   ;;  %v2498_v7 = vld [vmem:[#allocation2 + $0x120] ss:$16 sps:$4 sm:$0xff]   ;;  %v2499_v8 = vld [vmem:[#allocation2 + $0x128] ss:$16 sps:$4 sm:$0xff]  }
  0x3f   :  { %v2500_v9 = vld [vmem:[#allocation2 + $0x144] ss:$16 sps:$4 sm:$0xff]   ;;  %v2502_v10 = vld [vmem:[#allocation2 + $0x14c] ss:$16 sps:$4 sm:$0xff]   ;;  %v2504_v11 = vld [vmem:[#allocation2 + $0x140] ss:$16 sps:$4 sm:$0xff]  }
  0x40   :  { %v2505_v12 = vld [vmem:[#allocation2 + $0x148] ss:$16 sps:$4 sm:$0xff]   ;;  %v2516_v19 = vld [vmem:[#allocation2 + $0x180] ss:$16 sps:$4 sm:$0xff]   ;;  %v2518_v21 = vld [vmem:[#allocation2 + $0x1a4] ss:$16 sps:$4 sm:$0xff]  }
  0x41   :  { %1107 = vmatpush1.bf16.msra.mxu0 %v2420_v13  ;;  %1396 = vmatpush1.bf16.msra.mxu1 %v2421_v14  ;;  %v2506_v13 = vld [vmem:[#allocation2 + $0x164] ss:$16 sps:$4 sm:$0xff]   ;;  %v2508_v14 = vld [vmem:[#allocation2 + $0x16c] ss:$16 sps:$4 sm:$0xff]  }
  0x42   :  { %1108 = vmatprep.subr.bf16.mxu0 %v2908_v0  ;;  %1397 = vmatprep.subr.bf16.mxu1 %v2908_v0 }
  0x45   :  { %1109 = vmatpush1.bf16.msra.mxu0 %v2422_v15  ;;  %1398 = vmatpush1.bf16.msra.mxu1 %v2423_v16  ;;  %v2510_v15 = vld [vmem:[#allocation2 + $0x160] ss:$16 sps:$4 sm:$0xff]   ;;  %v2511_v16 = vld [vmem:[#allocation2 + $0x168] ss:$16 sps:$4 sm:$0xff]  }
  0x46   :  { %1110 = vmatprep.subr.bf16.mxu0 %v2908_v0  ;;  %1399 = vmatprep.subr.bf16.mxu1 %v2908_v0 }
  0x49   :  { %1111 = vmatpush2.bf16.msra.mxu0 %v2424_v17  ;;  %1400 = vmatpush2.bf16.msra.mxu1 %v2425_v18  ;;  %v2512_v17 = vld [vmem:[#allocation2 + $0x184] ss:$16 sps:$4 sm:$0xff]   ;;  %v2514_v18 = vld [vmem:[#allocation2 + $0x18c] ss:$16 sps:$4 sm:$0xff]  }
  0x4a   :  { %1112 = vmatprep.subr.bf16.mxu0 %v2908_v0  ;;  %1401 = vmatprep.subr.bf16.mxu1 %v2908_v0 }
  0x4d   :  { %1113 = vmatpush2.bf16.msra.mxu0 %v2426_v20  ;;  %1402 = vmatpush2.bf16.msra.mxu1 %v2427_v22  ;;  %v2517_v20 = vld [vmem:[#allocation2 + $0x188] ss:$16 sps:$4 sm:$0xff]   ;;  %v2520_v22 = vld [vmem:[#allocation2 + $0x1ac] ss:$16 sps:$4 sm:$0xff]  }
  0x4e   :  { %1114 = vmatprep.subr.bf16.mxu0 %v2908_v0  ;;  %1403 = vmatprep.subr.bf16.mxu1 %v2908_v0 }
  0x51   :  { %1115 = vmatpush2.bf16.msra.mxu0 %v2428_v23  ;;  %1404 = vmatpush2.bf16.msra.mxu1 %v2429_v24  ;;  %v2522_v23 = vld [vmem:[#allocation2 + $0x1a0] ss:$16 sps:$4 sm:$0xff]   ;;  %v2523_v24 = vld [vmem:[#allocation2 + $0x1a8] ss:$16 sps:$4 sm:$0xff]  }
  0x52   :  { %1116 = vmatprep.subr.bf16.mxu0 %v2908_v0  ;;  %1405 = vmatprep.subr.bf16.mxu1 %v2908_v0 }
  0x55   :  { %1117 = vmatpush2.bf16.msra.mxu0 %v2430_v25  ;;  %1406 = vmatpush2.bf16.msra.mxu1 %v2431_v26  ;;  %v2524_v25 = vld [vmem:[#allocation2 + $0x1c4] ss:$16 sps:$4 sm:$0xff]   ;;  %v2526_v26 = vld [vmem:[#allocation2 + $0x1cc] ss:$16 sps:$4 sm:$0xff]  }
  0x56   :  { %1118 = vmatprep.subr.bf16.mxu0 %v2908_v0  ;;  %1407 = vmatprep.subr.bf16.mxu1 %v2908_v0 }
  0x59   :  { %1119 = vmatpush2.bf16.msra.mxu0 %v2432_v27  ;;  %1408 = vmatpush2.bf16.msra.mxu1 %v2433_v28  ;;  %v2528_v27 = vld [vmem:[#allocation2 + $0x1c0] ss:$16 sps:$4 sm:$0xff]   ;;  %v2529_v28 = vld [vmem:[#allocation2 + $0x1c8] ss:$16 sps:$4 sm:$0xff]  }
  0x5a   :  { %1120 = vmatprep.subr.bf16.mxu0 %v2908_v0  ;;  %1409 = vmatprep.subr.bf16.mxu1 %v2908_v0 }
  0x5d   :  { %1121 = vmatpush2.bf16.msra.mxu0 %v2434_v29  ;;  %1410 = vmatpush2.bf16.msra.mxu1 %v2435_v30  ;;  %v2530_v29 = vld [vmem:[#allocation2 + $0x1e4] ss:$16 sps:$4 sm:$0xff]   ;;  %v2532_v30 = vld [vmem:[#allocation2 + $0x1ec] ss:$16 sps:$4 sm:$0xff]  }
  0x5e   :  { %1122 = vmatprep.subr.bf16.mxu0 %v2908_v0  ;;  %1411 = vmatprep.subr.bf16.mxu1 %v2908_v0 }
  0x61   :  { %1123 = vmatpush2.bf16.msra.mxu0 %v2436_v31  ;;  %1412 = vmatpush2.bf16.msra.mxu1 %v2437_v32  ;;  %v2534_v31 = vld [vmem:[#allocation2 + $0x1e0] ss:$16 sps:$4 sm:$0xff]   ;;  %v2535_v32 = vld [vmem:[#allocation2 + $0x1e8] ss:$16 sps:$4 sm:$0xff]  }
  0x62   :  { %1124 = vmatprep.subr.bf16.mxu0 %v2908_v0  ;;  %1413 = vmatprep.subr.bf16.mxu1 %v2908_v0  ;;  %v2487_v0 = vld [vmem:[#allocation2 + $0xe8] ss:$16 sps:$4 sm:$0xff]  }
  0x65   :  { %1125 = vmatpush2.bf16.msra.mxu0 %v2438_v33  ;;  %1414 = vmatpush2.bf16.msra.mxu1 %v2439_v34  ;;  %v2536_v33 = vld [vmem:[#allocation2 + $0x204] ss:$16 sps:$4 sm:$0xff]   ;;  %v2538_v34 = vld [vmem:[#allocation2 + $0x20c] ss:$16 sps:$4 sm:$0xff]  }
  0x68   :  { %1127 = vmatmul.mubr.bf16.vlgmr.msra.gmra.mxu0 %v2440_v35  ;;  %1416 = vmatmul.mubr.bf16.vlgmr.msra.gmra.mxu1 %v2443_v36  ;;  %v2540_v35 = vld [vmem:[#allocation2 + $0x200] ss:$16 sps:$4 sm:$0xff]   ;;  %v2541_v36 = vld [vmem:[#allocation2 + $0x208] ss:$16 sps:$4 sm:$0xff]  }
  0x69   :  { %1134 = vmatprep.mubr.bf16.mxu0 %v2446_v37  ;;  %1423 = vmatprep.mubr.bf16.mxu1 %v2448_v38  ;;  %v2542_v37 = vld [vmem:[#allocation2 + $0x224] ss:$16 sps:$4 sm:$0xff]   ;;  %v2544_v38 = vld [vmem:[#allocation2 + $0x22c] ss:$16 sps:$4 sm:$0xff]  }
  0x70   :  { %1135 = vmatmul.mubr.bf16.gmra.mxu0 %v2450_v39  ;;  %1424 = vmatmul.mubr.bf16.gmra.mxu1 %v2451_v40  ;;  %v2546_v39 = vld [vmem:[#allocation2 + $0x220] ss:$16 sps:$4 sm:$0xff]   ;;  %v2547_v40 = vld [vmem:[#allocation2 + $0x228] ss:$16 sps:$4 sm:$0xff]  }
  0x71   :  { %1142 = vmatprep.mubr.bf16.mxu0 %v2452_v41  ;;  %1431 = vmatprep.mubr.bf16.mxu1 %v2454_v42  ;;  %v2548_v41 = vld [vmem:[#allocation2 + $0x244] ss:$16 sps:$4 sm:$0xff]   ;;  %v2550_v42 = vld [vmem:[#allocation2 + $0x24c] ss:$16 sps:$4 sm:$0xff]  }
  0x78   :  { %1143 = vmatmul.mubr.bf16.gmra.mxu0 %v2456_v43  ;;  %1432 = vmatmul.mubr.bf16.gmra.mxu1 %v2457_v44  ;;  %v2552_v43 = vld [vmem:[#allocation2 + $0x240] ss:$16 sps:$4 sm:$0xff]   ;;  %v2553_v44 = vld [vmem:[#allocation2 + $0x248] ss:$16 sps:$4 sm:$0xff]  }
  0x79   :  { %1150 = vmatprep.mubr.bf16.mxu0 %v2458_v45  ;;  %1439 = vmatprep.mubr.bf16.mxu1 %v2460_v46  ;;  %v2554_v45 = vld [vmem:[#allocation2 + $0x264] ss:$16 sps:$4 sm:$0xff]   ;;  %v2556_v46 = vld [vmem:[#allocation2 + $0x26c] ss:$16 sps:$4 sm:$0xff]  }
  0x80   :  { %1151 = vmatmul.mubr.bf16.gmra.mxu0 %v2462_v47  ;;  %1440 = vmatmul.mubr.bf16.gmra.mxu1 %v2463_v48  ;;  %v2558_v47 = vld [vmem:[#allocation2 + $0x260] ss:$16 sps:$4 sm:$0xff]   ;;  %v2559_v48 = vld [vmem:[#allocation2 + $0x268] ss:$16 sps:$4 sm:$0xff]  }
  0x81   :  { %1158 = vmatprep.mubr.bf16.mxu0 %v2464_v49  ;;  %1447 = vmatprep.mubr.bf16.mxu1 %v2466_v50  ;;  %v2560_v49 = vld [vmem:[#allocation2 + $0x284] ss:$16 sps:$4 sm:$0xff]   ;;  %v2562_v50 = vld [vmem:[#allocation2 + $0x28c] ss:$16 sps:$4 sm:$0xff]  }
  0x88   :  { %1159 = vmatmul.mubr.bf16.gmra.mxu0 %v2468_v51  ;;  %1448 = vmatmul.mubr.bf16.gmra.mxu1 %v2469_v52  ;;  %v2564_v51 = vld [vmem:[#allocation2 + $0x280] ss:$16 sps:$4 sm:$0xff]   ;;  %v2565_v52 = vld [vmem:[#allocation2 + $0x288] ss:$16 sps:$4 sm:$0xff]  }
  0x89   :  { %1166 = vmatprep.mubr.bf16.mxu0 %v2470_v53  ;;  %1455 = vmatprep.mubr.bf16.mxu1 %v2472_v54  ;;  %v2566_v53 = vld [vmem:[#allocation2 + $0x2a4] ss:$16 sps:$4 sm:$0xff]   ;;  %v2568_v54 = vld [vmem:[#allocation2 + $0x2ac] ss:$16 sps:$4 sm:$0xff]  }
  0x90   :  { %1167 = vmatmul.mubr.bf16.gmra.mxu0 %v2474_v55  ;;  %1456 = vmatmul.mubr.bf16.gmra.mxu1 %v2475_v56  ;;  %v2570_v55 = vld [vmem:[#allocation2 + $0x2a0] ss:$16 sps:$4 sm:$0xff]   ;;  %v2571_v56 = vld [vmem:[#allocation2 + $0x2a8] ss:$16 sps:$4 sm:$0xff]  }
  0x91   :  { %1174 = vmatprep.mubr.bf16.mxu0 %v2476_v57  ;;  %1463 = vmatprep.mubr.bf16.mxu1 %v2478_v58  ;;  %v2572_v57 = vld [vmem:[#allocation2 + $0x2c4] ss:$16 sps:$4 sm:$0xff]   ;;  %v2574_v58 = vld [vmem:[#allocation2 + $0x2cc] ss:$16 sps:$4 sm:$0xff]  }
  0x98   :  { %1175 = vmatmul.mubr.bf16.gmra.mxu0 %v2480_v59  ;;  %1464 = vmatmul.mubr.bf16.gmra.mxu1 %v2481_v60  ;;  %v2576_v59 = vld [vmem:[#allocation2 + $0x2c0] ss:$16 sps:$4 sm:$0xff]   ;;  %v2577_v60 = vld [vmem:[#allocation2 + $0x2c8] ss:$16 sps:$4 sm:$0xff]  }
  0x99   :  { %1182 = vmatprep.mubr.bf16.mxu0 %v2482_v61  ;;  %1471 = vmatprep.mubr.bf16.mxu1 %v2484_v62  ;;  %v2578_v61 = vld [vmem:[#allocation2 + $0x2e4] ss:$16 sps:$4 sm:$0xff]   ;;  %v2580_v62 = vld [vmem:[#allocation2 + $0x2ec] ss:$16 sps:$4 sm:$0xff]  }
  0xa0   :  { %1183 = vmatmul.mubr.bf16.gmra.mxu0 %v2486_v63  ;;  %1472 = vmatmul.mubr.bf16.gmra.mxu1 %v2487_v0  ;;  %v2582_v63 = vld [vmem:[#allocation2 + $0x2e0] ss:$16 sps:$4 sm:$0xff]   ;;  %v2583_v0 = vld [vmem:[#allocation2 + $0x2e8] ss:$16 sps:$4 sm:$0xff]  }
  0xa1   :  { %1190 = vmatprep.mubr.bf16.mxu0 %v2488_v1  ;;  %1479 = vmatprep.mubr.bf16.mxu1 %v2490_v2  ;;  %v2584_v1 = vld [vmem:[#allocation2 + $0x304] ss:$16 sps:$4 sm:$0xff]   ;;  %v2586_v2 = vld [vmem:[#allocation2 + $0x30c] ss:$16 sps:$4 sm:$0xff]  }
  0xa8   :  { %1191 = vmatmul.mubr.bf16.gmra.mxu0 %v2492_v3  ;;  %1480 = vmatmul.mubr.bf16.gmra.mxu1 %v2493_v4  ;;  %v2588_v3 = vld [vmem:[#allocation2 + $0x300] ss:$16 sps:$4 sm:$0xff]   ;;  %v2589_v4 = vld [vmem:[#allocation2 + $0x308] ss:$16 sps:$4 sm:$0xff]  }
  0xa9   :  { %1198 = vmatprep.mubr.bf16.mxu0 %v2494_v5  ;;  %1487 = vmatprep.mubr.bf16.mxu1 %v2496_v6  ;;  %v2590_v5 = vld [vmem:[#allocation2 + $0x324] ss:$16 sps:$4 sm:$0xff]   ;;  %v2991_v6 = vld [vmem:[%s3131_s3] ss:$0 sm:$0xff] }
  0xb0   :  { %1199 = vmatmul.mubr.bf16.gmra.mxu0 %v2498_v7  ;;  %1488 = vmatmul.mubr.bf16.gmra.mxu1 %v2499_v8  ;;  %v2592_v7 = vld [vmem:[#allocation2 + $0x32c] ss:$16 sps:$4 sm:$0xff]  }
  0xb1   :  { %1206 = vmatprep.mubr.bf16.mxu0 %v2500_v9  ;;  %1495 = vmatprep.mubr.bf16.mxu1 %v2502_v10 }
  0xb8   :  { %1207 = vmatmul.mubr.bf16.gmra.mxu0 %v2504_v11  ;;  %1496 = vmatmul.mubr.bf16.gmra.mxu1 %v2505_v12 }
  0xb9   :  { %1214 = vmatprep.mubr.bf16.mxu0 %v2506_v13  ;;  %1503 = vmatprep.mubr.bf16.mxu1 %v2508_v14 }
  0xc0   :  { %1215 = vmatmul.mubr.bf16.gmra.mxu0 %v2510_v15  ;;  %1504 = vmatmul.mubr.bf16.gmra.mxu1 %v2511_v16  ;;  %v2594_v15 = vld [vmem:[#allocation2 + $0x320] ss:$16 sps:$4 sm:$0xff]  }
  0xc1   :  { %1222 = vmatprep.mubr.bf16.mxu0 %v2512_v17  ;;  %1511 = vmatprep.mubr.bf16.mxu1 %v2514_v18 }
  0xc8   :  { %1223 = vmatmul.mubr.bf16.gmra.mxu0 %v2516_v19  ;;  %1512 = vmatmul.mubr.bf16.gmra.mxu1 %v2517_v20  ;;  %v2595_v19 = vld [vmem:[#allocation2 + $0x328] ss:$16 sps:$4 sm:$0xff]   ;;  %v2596_v20 = vld [vmem:[#allocation2 + $0x344] ss:$16 sps:$4 sm:$0xff]  }
  0xc9   :  { %1230 = vmatprep.mubr.bf16.mxu0 %v2518_v21  ;;  %1519 = vmatprep.mubr.bf16.mxu1 %v2520_v22  ;;  %v2598_v22 = vld [vmem:[#allocation2 + $0x34c] ss:$16 sps:$4 sm:$0xff]  }
  0xd0   :  { %1231 = vmatmul.mubr.bf16.gmra.mxu0 %v2522_v23  ;;  %1520 = vmatmul.mubr.bf16.gmra.mxu1 %v2523_v24 }
  0xd1   :  { %1238 = vmatprep.mubr.bf16.mxu0 %v2524_v25  ;;  %1527 = vmatprep.mubr.bf16.mxu1 %v2526_v26 }
  0xd8   :  { %1239 = vmatmul.mubr.bf16.gmra.mxu0 %v2528_v27  ;;  %1528 = vmatmul.mubr.bf16.gmra.mxu1 %v2529_v28 }
  0xd9   :  { %1246 = vmatprep.mubr.bf16.mxu0 %v2530_v29  ;;  %1535 = vmatprep.mubr.bf16.mxu1 %v2532_v30 }
  0xe0   :  { %1247 = vmatmul.mubr.bf16.gmra.mxu0 %v2534_v31  ;;  %1536 = vmatmul.mubr.bf16.gmra.mxu1 %v2535_v32 }
  0xe1   :  { %1254 = vmatprep.mubr.bf16.mxu0 %v2536_v33  ;;  %1543 = vmatprep.mubr.bf16.mxu1 %v2538_v34  ;;  %v2600_v33 = vld [vmem:[#allocation2 + $0x340] ss:$16 sps:$4 sm:$0xff]  }
  0xe8   :  { %1255 = vmatmul.mubr.bf16.gmra.mxu0 %v2540_v35  ;;  %1544 = vmatmul.mubr.bf16.gmra.mxu1 %v2541_v36 }
  0xe9   :  { %1262 = vmatprep.mubr.bf16.mxu0 %v2542_v37  ;;  %1551 = vmatprep.mubr.bf16.mxu1 %v2544_v38  ;;  %v2601_v37 = vld [vmem:[#allocation2 + $0x348] ss:$16 sps:$4 sm:$0xff]   ;;  %v2602_v38 = vld [vmem:[#allocation2 + $0x364] ss:$16 sps:$4 sm:$0xff]  }
  0xf0   :  { %1263 = vmatmul.mubr.bf16.gmra.mxu0 %v2546_v39  ;;  %1552 = vmatmul.mubr.bf16.gmra.mxu1 %v2547_v40  ;;  %v2604_v40 = vld [vmem:[#allocation2 + $0x36c] ss:$16 sps:$4 sm:$0xff]  }
  0xf1   :  { %1270 = vmatprep.mubr.bf16.mxu0 %v2548_v41  ;;  %1559 = vmatprep.mubr.bf16.mxu1 %v2550_v42 }
  0xf8   :  { %1271 = vmatmul.mubr.bf16.gmra.mxu0 %v2552_v43  ;;  %1560 = vmatmul.mubr.bf16.gmra.mxu1 %v2553_v44 }
  0xf9   :  { %1278 = vmatprep.mubr.bf16.mxu0 %v2554_v45  ;;  %1567 = vmatprep.mubr.bf16.mxu1 %v2556_v46 }
 0x100   :  { %1279 = vmatmul.mubr.bf16.gmra.mxu0 %v2558_v47  ;;  %1568 = vmatmul.mubr.bf16.gmra.mxu1 %v2559_v48 }
 0x101   :  { %1286 = vmatprep.mubr.bf16.mxu0 %v2560_v49  ;;  %1575 = vmatprep.mubr.bf16.mxu1 %v2562_v50 }
 0x108   :  { %1287 = vmatmul.mubr.bf16.gmra.mxu0 %v2564_v51  ;;  %1576 = vmatmul.mubr.bf16.gmra.mxu1 %v2565_v52  ;;  %v2606_v51 = vld [vmem:[#allocation2 + $0x360] ss:$16 sps:$4 sm:$0xff]  }
 0x109   :  { %1294 = vmatprep.mubr.bf16.mxu0 %v2566_v53  ;;  %1583 = vmatprep.mubr.bf16.mxu1 %v2568_v54 }
 0x110   :  { %1295 = vmatmul.mubr.bf16.gmra.mxu0 %v2570_v55  ;;  %1584 = vmatmul.mubr.bf16.gmra.mxu1 %v2571_v56  ;;  %v2607_v55 = vld [vmem:[#allocation2 + $0x368] ss:$16 sps:$4 sm:$0xff]   ;;  %v2610_v56 = vld [vmem:[#allocation2 + $0x384] ss:$16 sps:$4 sm:$0xff]  }
 0x111   :  { %1302 = vmatprep.mubr.bf16.mxu0 %v2572_v57  ;;  %1591 = vmatprep.mubr.bf16.mxu1 %v2574_v58  ;;  %v2613_v58 = vld [vmem:[#allocation2 + $0x38c] ss:$16 sps:$4 sm:$0xff]  }
 0x118   :  { %1303 = vmatmul.mubr.bf16.gmra.mxu0 %v2576_v59  ;;  %1592 = vmatmul.mubr.bf16.gmra.mxu1 %v2577_v60 }
 0x119   :  { %1310 = vmatprep.mubr.bf16.mxu0 %v2578_v61  ;;  %1599 = vmatprep.mubr.bf16.mxu1 %v2580_v62 }
 0x120   :  { %1311 = vmatmul.mubr.bf16.gmra.mxu0 %v2582_v63  ;;  %1600 = vmatmul.mubr.bf16.gmra.mxu1 %v2583_v0 }
 0x121   :  { %1318 = vmatprep.mubr.bf16.mxu0 %v2584_v1  ;;  %1607 = vmatprep.mubr.bf16.mxu1 %v2586_v2 }
 0x128   :  { %v1128_v8 = vpop.f32.mrf.mxu0  ;;  %1319 = vmatmul.mubr.bf16.gmra.mxu0 %v2588_v3  ;;  %v1417_v10 = vpop.f32.mrf.mxu1  ;;  %1608 = vmatmul.mubr.bf16.gmra.mxu1 %v2589_v4 }
 0x129   :  { %v1129_v9 = vadd.f32 %v2991_v6, %v1128_v8  ;;  %1326 = vmatprep.mubr.bf16.mxu0 %v2590_v5  ;;  %1615 = vmatprep.mubr.bf16.mxu1 %v2592_v7  ;;  %v2608_v5 = vld [vmem:[#allocation2 + $0x380] ss:$16 sps:$4 sm:$0xff]  }
 0x12a   :  { %v1130_v11 = vpop.f32.mrf.mxu0  ;;  %v1419_v12 = vpop.f32.mrf.mxu1 }
 0x12b   :  { %v1418_v13 = vadd.f32 %v1417_v10, %v1129_v9  ;;  %v2611_v10 = vld [vmem:[#allocation2 + $0x388] ss:$16 sps:$4 sm:$0xff]   ;;  %v2616_v11 = vld [vmem:[#allocation2 + $0x3a4] ss:$16 sps:$4 sm:$0xff]  }
 0x12c   :  { %v1131_v14 = vpop.f32.mrf.mxu0  ;;  %v1420_v17 = vpop.f32.mrf.mxu1 }
 0x12d   :  { %v1132_v16 = vadd.f32 %v2991_v6, %v1131_v14  ;;  %v1672_v18 = vmax.f32 %v1418_v13, 0.0  ;;  %v2619_v13 = vld [vmem:[#allocation2 + $0x3ac] ss:$16 sps:$4 sm:$0xff]  }
 0x12e   :  { %v1133_v21 = vpop.f32.mrf.mxu0  ;;  %v1422_v24 = vpop.f32.mrf.mxu1 }
 0x12f   :  { %v1421_v23 = vadd.f32 %v1420_v17, %v1132_v16  ;;  %1736 = vxpose.xlu0.b32.start [1/16] %v1672_v18, 128  ;;  %v2614_v24 = vld [vmem:[#allocation2 + $0x3a0] ss:$16 sps:$4 sm:$0xff]  }
 0x130   :  { %v1136_v25 = vpop.f32.mrf.mxu0  ;;  %1327 = vmatmul.mubr.bf16.gmra.mxu0 %v2594_v15  ;;  %v1425_v28 = vpop.f32.mrf.mxu1  ;;  %1616 = vmatmul.mubr.bf16.gmra.mxu1 %v2595_v19 }
 0x131   :  { %v1673_v26 = vmax.f32 %v1421_v23, 0.0  ;;  %v1137_v27 = vadd.f32 %v2991_v6, %v1136_v25  ;;  %1334 = vmatprep.mubr.bf16.mxu0 %v2596_v20  ;;  %1623 = vmatprep.mubr.bf16.mxu1 %v2598_v22 }
 0x132   :  { %v1138_v29 = vpop.f32.mrf.mxu0  ;;  %v1427_v31 = vpop.f32.mrf.mxu1 }
 0x133   :  { %v1426_v30 = vadd.f32 %v1425_v28, %v1137_v27  ;;  %1737 = vxpose.xlu0.b32.cont [2/16] %v1673_v26, 128  ;;  %v2617_v28 = vld [vmem:[#allocation2 + $0x3a8] ss:$16 sps:$4 sm:$0xff]   ;;  %v2622_v29 = vld [vmem:[#allocation2 + $0x3c4] ss:$16 sps:$4 sm:$0xff]   ;;  %v2625_v31 = vld [vmem:[#allocation2 + $0x3cc] ss:$16 sps:$4 sm:$0xff]  }
 0x134   :  { %v1139_v32 = vpop.f32.mrf.mxu0  ;;  %v1428_v36 = vpop.f32.mrf.mxu1 }
 0x135   :  { %v1674_v34 = vmax.f32 %v1426_v30, 0.0  ;;  %v1140_v35 = vadd.f32 %v2991_v6, %v1139_v32 }
 0x136   :  { %v1141_v39 = vpop.f32.mrf.mxu0  ;;  %v1430_v42 = vpop.f32.mrf.mxu1 }
 0x137   :  { %v1429_v41 = vadd.f32 %v1428_v36, %v1140_v35  ;;  %1738 = vxpose.xlu0.b32.cont [3/16] %v1674_v34, 128  ;;  %v2620_v42 = vld [vmem:[#allocation2 + $0x3c0] ss:$16 sps:$4 sm:$0xff]  }
 0x138   :  { %v1144_v43 = vpop.f32.mrf.mxu0  ;;  %1335 = vmatmul.mubr.bf16.gmra.mxu0 %v2600_v33  ;;  %v1433_v46 = vpop.f32.mrf.mxu1  ;;  %1624 = vmatmul.mubr.bf16.gmra.mxu1 %v2601_v37 }
 0x139   :  { %v1675_v44 = vmax.f32 %v1429_v41, 0.0  ;;  %v1145_v45 = vadd.f32 %v2991_v6, %v1144_v43  ;;  %1342 = vmatprep.mubr.bf16.mxu0 %v2602_v38  ;;  %1631 = vmatprep.mubr.bf16.mxu1 %v2604_v40 }
 0x13a   :  { %v1146_v47 = vpop.f32.mrf.mxu0  ;;  %v1435_v49 = vpop.f32.mrf.mxu1 }
 0x13b   :  { %v1434_v48 = vadd.f32 %v1433_v46, %v1145_v45  ;;  %1739 = vxpose.xlu0.b32.cont [4/16] %v1675_v44, 128  ;;  %v2623_v46 = vld [vmem:[#allocation2 + $0x3c8] ss:$16 sps:$4 sm:$0xff]   ;;  %v2628_v47 = vld [vmem:[#allocation2 + $0x3e4] ss:$16 sps:$4 sm:$0xff]   ;;  %v2631_v49 = vld [vmem:[#allocation2 + $0x3ec] ss:$16 sps:$4 sm:$0xff]  }
 0x13c   :  { %v1147_v50 = vpop.f32.mrf.mxu0  ;;  %v1436_v54 = vpop.f32.mrf.mxu1 }
 0x13d   :  { %v1676_v52 = vmax.f32 %v1434_v48, 0.0  ;;  %v1148_v53 = vadd.f32 %v2991_v6, %v1147_v50 }
 0x13e   :  { %v1149_v57 = vpop.f32.mrf.mxu0  ;;  %v1438_v60 = vpop.f32.mrf.mxu1 }
 0x13f   :  { %v1437_v59 = vadd.f32 %v1436_v54, %v1148_v53  ;;  %1740 = vxpose.xlu0.b32.cont [5/16] %v1676_v52, 128  ;;  %v2626_v60 = vld [vmem:[#allocation2 + $0x3e0] ss:$16 sps:$4 sm:$0xff]  }
 0x140   :  { %v1152_v61 = vpop.f32.mrf.mxu0  ;;  %1343 = vmatmul.mubr.bf16.gmra.mxu0 %v2606_v51  ;;  %v1441_v0 = vpop.f32.mrf.mxu1  ;;  %1632 = vmatmul.mubr.bf16.gmra.mxu1 %v2607_v55 }
 0x141   :  { %v1677_v62 = vmax.f32 %v1437_v59, 0.0  ;;  %v1153_v63 = vadd.f32 %v2991_v6, %v1152_v61  ;;  %1350 = vmatprep.mubr.bf16.mxu0 %v2610_v56  ;;  %1639 = vmatprep.mubr.bf16.mxu1 %v2613_v58 }
 0x142   :  { %v1154_v1 = vpop.f32.mrf.mxu0  ;;  %v1443_v3 = vpop.f32.mrf.mxu1 }
 0x143   :  { %v1442_v2 = vadd.f32 %v1441_v0, %v1153_v63  ;;  %1741 = vxpose.xlu0.b32.cont [6/16] %v1677_v62, 128  ;;  %v2629_v0 = vld [vmem:[#allocation2 + $0x3e8] ss:$16 sps:$4 sm:$0xff]  }
 0x144   :  { %v1155_v4 = vpop.f32.mrf.mxu0  ;;  %v1444_v9 = vpop.f32.mrf.mxu1 }
 0x145   :  { %v1678_v7 = vmax.f32 %v1442_v2, 0.0  ;;  %v1156_v8 = vadd.f32 %v2991_v6, %v1155_v4 }
 0x146   :  { %v1157_v12 = vpop.f32.mrf.mxu0  ;;  %v1446_v15 = vpop.f32.mrf.mxu1 }
 0x147   :  { %v1445_v14 = vadd.f32 %v1444_v9, %v1156_v8  ;;  %1742 = vxpose.xlu0.b32.cont [7/16] %v1678_v7, 128 }
 0x148   :  { %v1160_v16 = vpop.f32.mrf.mxu0  ;;  %1351 = vmatmul.mubr.bf16.gmra.mxu0 %v2608_v5  ;;  %v1449_v19 = vpop.f32.mrf.mxu1  ;;  %1640 = vmatmul.mubr.bf16.gmra.mxu1 %v2611_v10 }
 0x149   :  { %v1679_v17 = vmax.f32 %v1445_v14, 0.0  ;;  %v1161_v18 = vadd.f32 %v2991_v6, %v1160_v16  ;;  %1358 = vmatprep.mubr.bf16.mxu0 %v2616_v11  ;;  %1647 = vmatprep.mubr.bf16.mxu1 %v2619_v13 }
 0x14a   :  { %v1162_v20 = vpop.f32.mrf.mxu0  ;;  %v1451_v22 = vpop.f32.mrf.mxu1 }
 0x14b   :  { %v1450_v21 = vadd.f32 %v1449_v19, %v1161_v18  ;;  %1743 = vxpose.xlu0.b32.cont [8/16] %v1679_v17, 128 }
 0x14c   :  { %v1163_v23 = vpop.f32.mrf.mxu0  ;;  %v1452_v27 = vpop.f32.mrf.mxu1 }
 0x14d   :  { %v1680_v25 = vmax.f32 %v1450_v21, 0.0  ;;  %v1164_v26 = vadd.f32 %v2991_v6, %v1163_v23 }
 0x14e   :  { %v1165_v30 = vpop.f32.mrf.mxu0  ;;  %v1454_v33 = vpop.f32.mrf.mxu1 }
 0x14f   :  { %v1453_v32 = vadd.f32 %v1452_v27, %v1164_v26  ;;  %1744 = vxpose.xlu0.b32.cont [9/16] %v1680_v25, 128 }
 0x150   :  { %v1168_v34 = vpop.f32.mrf.mxu0  ;;  %1359 = vmatmul.mubr.bf16.gmra.mxu0 %v2614_v24  ;;  %v1457_v37 = vpop.f32.mrf.mxu1  ;;  %1648 = vmatmul.mubr.bf16.gmra.mxu1 %v2617_v28 }
 0x151   :  { %v1681_v35 = vmax.f32 %v1453_v32, 0.0  ;;  %v1169_v36 = vadd.f32 %v2991_v6, %v1168_v34  ;;  %1366 = vmatprep.mubr.bf16.mxu0 %v2622_v29  ;;  %1655 = vmatprep.mubr.bf16.mxu1 %v2625_v31 }
 0x152   :  { %v1170_v38 = vpop.f32.mrf.mxu0  ;;  %v1459_v40 = vpop.f32.mrf.mxu1 }
 0x153   :  { %v1458_v39 = vadd.f32 %v1457_v37, %v1169_v36  ;;  %1745 = vxpose.xlu0.b32.cont [10/16] %v1681_v35, 128 }
 0x154   :  { %v1171_v41 = vpop.f32.mrf.mxu0  ;;  %v1460_v45 = vpop.f32.mrf.mxu1 }
 0x155   :  { %v1682_v43 = vmax.f32 %v1458_v39, 0.0  ;;  %v1172_v44 = vadd.f32 %v2991_v6, %v1171_v41 }
 0x156   :  { %v1173_v48 = vpop.f32.mrf.mxu0  ;;  %v1462_v51 = vpop.f32.mrf.mxu1 }
 0x157   :  { %v1461_v50 = vadd.f32 %v1460_v45, %v1172_v44  ;;  %1746 = vxpose.xlu0.b32.cont [11/16] %v1682_v43, 128 }
 0x158   :  { %v1176_v52 = vpop.f32.mrf.mxu0  ;;  %1367 = vmatmul.mubr.bf16.gmra.mxu0 %v2620_v42  ;;  %v1465_v55 = vpop.f32.mrf.mxu1  ;;  %1656 = vmatmul.mubr.bf16.gmra.mxu1 %v2623_v46 }
 0x159   :  { %v1683_v53 = vmax.f32 %v1461_v50, 0.0  ;;  %v1177_v54 = vadd.f32 %v2991_v6, %v1176_v52  ;;  %1374 = vmatprep.mubr.bf16.mxu0 %v2628_v47  ;;  %1663 = vmatprep.mubr.bf16.mxu1 %v2631_v49 }
 0x15a   :  { %v1178_v56 = vpop.f32.mrf.mxu0  ;;  %v1467_v58 = vpop.f32.mrf.mxu1 }
 0x15b   :  { %v1466_v57 = vadd.f32 %v1465_v55, %v1177_v54  ;;  %1747 = vxpose.xlu0.b32.cont [12/16] %v1683_v53, 128 }
 0x15c   :  { %v1179_v59 = vpop.f32.mrf.mxu0  ;;  %v1468_v63 = vpop.f32.mrf.mxu1 }
 0x15d   :  { %v1684_v61 = vmax.f32 %v1466_v57, 0.0  ;;  %v1180_v62 = vadd.f32 %v2991_v6, %v1179_v59 }
 0x15e   :  { %v1181_v1 = vpop.f32.mrf.mxu0  ;;  %v1470_v3 = vpop.f32.mrf.mxu1 }
 0x15f   :  { %v1469_v2 = vadd.f32 %v1468_v63, %v1180_v62  ;;  %1748 = vxpose.xlu0.b32.cont [13/16] %v1684_v61, 128 }
 0x160   :  { %v1184_v4 = vpop.f32.mrf.mxu0  ;;  %1375 = vmatmul.mubr.bf16.gmra.mxu0 %v2626_v60  ;;  %v1473_v8 = vpop.f32.mrf.mxu1  ;;  %1664 = vmatmul.mubr.bf16.gmra.mxu1 %v2629_v0 }
 0x161   :  { %v1685_v5 = vmax.f32 %v1469_v2, 0.0  ;;  %v1185_v7 = vadd.f32 %v2991_v6, %v1184_v4 }
 0x162   :  { %v1186_v9 = vpop.f32.mrf.mxu0  ;;  %v1475_v11 = vpop.f32.mrf.mxu1 }
 0x163   :  { %v1474_v10 = vadd.f32 %v1473_v8, %v1185_v7  ;;  %1749 = vxpose.xlu0.b32.cont [14/16] %v1685_v5, 128 }
 0x164   :  { %v1187_v12 = vpop.f32.mrf.mxu0  ;;  %v1476_v15 = vpop.f32.mrf.mxu1 }
 0x165   :  { %v1686_v13 = vmax.f32 %v1474_v10, 0.0  ;;  %v1188_v14 = vadd.f32 %v2991_v6, %v1187_v12 }
 0x166   :  { %v1189_v16 = vpop.f32.mrf.mxu0  ;;  %v1478_v18 = vpop.f32.mrf.mxu1 }
 0x167   :  { %v1477_v17 = vadd.f32 %v1476_v15, %v1188_v14  ;;  %1750 = vxpose.xlu0.b32.cont [15/16] %v1686_v13, 128 }
 0x168   :  { %v1192_v19 = vpop.f32.mrf.mxu0  ;;  %v1481_v22 = vpop.f32.mrf.mxu1 }
 0x169   :  { %v1687_v20 = vmax.f32 %v1477_v17, 0.0  ;;  %v1193_v21 = vadd.f32 %v2991_v6, %v1192_v19 }
 0x16a   :  { %v1194_v23 = vpop.f32.mrf.mxu0  ;;  %v1483_v24 = vpop.f32.mrf.mxu1 }
 0x16b   :  { %1751 = vxpose.xlu0.b32.end [16/16] %v1687_v20, 128  ;;  %v1482_v25 = vadd.f32 %v1481_v22, %v1193_v21 }
 0x16c   :  { %v1195_v26 = vpop.f32.mrf.mxu0  ;;  %v1484_v28 = vpop.f32.mrf.mxu1 }
 0x16d   :  { %v1196_v27 = vadd.f32 %v2991_v6, %v1195_v26  ;;  %v1688_v29 = vmax.f32 %v1482_v25, 0.0 }
 0x16e   :  { %v1197_v30 = vpop.f32.mrf.mxu0  ;;  %v1486_v32 = vpop.f32.mrf.mxu1 }
 0x16f   :  { %v1485_v31 = vadd.f32 %v1484_v28, %v1196_v27  ;;  %1768 = vxpose.xlu1.b32.start [1/16] %v1688_v29, 128 }
 0x170   :  { %v1200_v33 = vpop.f32.mrf.mxu0  ;;  %v1489_v36 = vpop.f32.mrf.mxu1 }
 0x171   :  { %v1689_v34 = vmax.f32 %v1485_v31, 0.0  ;;  %v1201_v35 = vadd.f32 %v2991_v6, %v1200_v33 }
 0x172   :  { %v1202_v37 = vpop.f32.mrf.mxu0  ;;  %v1491_v39 = vpop.f32.mrf.mxu1 }
 0x173   :  { %v1490_v38 = vadd.f32 %v1489_v36, %v1201_v35  ;;  %1769 = vxpose.xlu1.b32.cont [2/16] %v1689_v34, 128 }
 0x174   :  { %v1203_v40 = vpop.f32.mrf.mxu0  ;;  %v1492_v43 = vpop.f32.mrf.mxu1 }
 0x175   :  { %v1690_v41 = vmax.f32 %v1490_v38, 0.0  ;;  %v1204_v42 = vadd.f32 %v2991_v6, %v1203_v40 }
 0x176   :  { %v1205_v44 = vpop.f32.mrf.mxu0  ;;  %v1494_v46 = vpop.f32.mrf.mxu1 }
 0x177   :  { %v1493_v45 = vadd.f32 %v1492_v43, %v1204_v42  ;;  %1770 = vxpose.xlu1.b32.cont [3/16] %v1690_v41, 128 }
 0x178   :  { %v1208_v47 = vpop.f32.mrf.mxu0  ;;  %v1497_v50 = vpop.f32.mrf.mxu1 }
 0x179   :  { %v1691_v48 = vmax.f32 %v1493_v45, 0.0  ;;  %v1209_v49 = vadd.f32 %v2991_v6, %v1208_v47 }
 0x17a   :  { %v1210_v51 = vpop.f32.mrf.mxu0  ;;  %v1499_v53 = vpop.f32.mrf.mxu1 }
 0x17b   :  { %v1498_v52 = vadd.f32 %v1497_v50, %v1209_v49  ;;  %1771 = vxpose.xlu1.b32.cont [4/16] %v1691_v48, 128 }
 0x17c   :  { %v1211_v54 = vpop.f32.mrf.mxu0  ;;  %v1500_v57 = vpop.f32.mrf.mxu1 }
 0x17d   :  { %v1692_v55 = vmax.f32 %v1498_v52, 0.0  ;;  %v1212_v56 = vadd.f32 %v2991_v6, %v1211_v54 }
 0x17e   :  { %v1213_v58 = vpop.f32.mrf.mxu0  ;;  %v1502_v60 = vpop.f32.mrf.mxu1 }
 0x17f   :  { %v1501_v59 = vadd.f32 %v1500_v57, %v1212_v56  ;;  %1772 = vxpose.xlu1.b32.cont [5/16] %v1692_v55, 128 }
 0x180   :  { %v1216_v61 = vpop.f32.mrf.mxu0  ;;  %v1505_v0 = vpop.f32.mrf.mxu1 }
 0x181   :  { %v1693_v62 = vmax.f32 %v1501_v59, 0.0  ;;  %v1217_v63 = vadd.f32 %v2991_v6, %v1216_v61 }
 0x182   :  { %v1218_v1 = vpop.f32.mrf.mxu0  ;;  %v1507_v3 = vpop.f32.mrf.mxu1 }
 0x183   :  { %v1506_v2 = vadd.f32 %v1505_v0, %v1217_v63  ;;  %1773 = vxpose.xlu1.b32.cont [6/16] %v1693_v62, 128 }
 0x184   :  { %v1219_v4 = vpop.f32.mrf.mxu0  ;;  %v1508_v8 = vpop.f32.mrf.mxu1 }
 0x185   :  { %v1694_v5 = vmax.f32 %v1506_v2, 0.0  ;;  %v1220_v7 = vadd.f32 %v2991_v6, %v1219_v4 }
 0x186   :  { %v1221_v9 = vpop.f32.mrf.mxu0  ;;  %v1510_v11 = vpop.f32.mrf.mxu1 }
 0x187   :  { %v1509_v10 = vadd.f32 %v1508_v8, %v1220_v7  ;;  %1774 = vxpose.xlu1.b32.cont [7/16] %v1694_v5, 128 }
 0x188   :  { %v1224_v12 = vpop.f32.mrf.mxu0  ;;  %v1513_v15 = vpop.f32.mrf.mxu1 }
 0x189   :  { %v1695_v13 = vmax.f32 %v1509_v10, 0.0  ;;  %v1225_v14 = vadd.f32 %v2991_v6, %v1224_v12 }
 0x18a   :  { %v1226_v16 = vpop.f32.mrf.mxu0  ;;  %v1515_v18 = vpop.f32.mrf.mxu1 }
 0x18b   :  { %v1514_v17 = vadd.f32 %v1513_v15, %v1225_v14  ;;  %1775 = vxpose.xlu1.b32.cont [8/16] %v1695_v13, 128 }
 0x18c   :  { %v1227_v19 = vpop.f32.mrf.mxu0  ;;  %v1516_v22 = vpop.f32.mrf.mxu1 }
 0x18d   :  { %v1696_v20 = vmax.f32 %v1514_v17, 0.0  ;;  %v1228_v21 = vadd.f32 %v2991_v6, %v1227_v19 }
 0x18e   :  { %v1229_v23 = vpop.f32.mrf.mxu0  ;;  %v1518_v25 = vpop.f32.mrf.mxu1 }
 0x18f   :  { %v1517_v24 = vadd.f32 %v1516_v22, %v1228_v21  ;;  %1776 = vxpose.xlu1.b32.cont [9/16] %v1696_v20, 128 }
 0x190   :  { %v1232_v26 = vpop.f32.mrf.mxu0  ;;  %v1521_v29 = vpop.f32.mrf.mxu1 }
 0x191   :  { %v1697_v27 = vmax.f32 %v1517_v24, 0.0  ;;  %v1233_v28 = vadd.f32 %v2991_v6, %v1232_v26 }
 0x192   :  { %v1234_v30 = vpop.f32.mrf.mxu0  ;;  %v1523_v32 = vpop.f32.mrf.mxu1 }
 0x193   :  { %v1522_v31 = vadd.f32 %v1521_v29, %v1233_v28  ;;  %1777 = vxpose.xlu1.b32.cont [10/16] %v1697_v27, 128 }
 0x194   :  { %v1235_v33 = vpop.f32.mrf.mxu0  ;;  %v1524_v36 = vpop.f32.mrf.mxu1 }
 0x195   :  { %v1698_v34 = vmax.f32 %v1522_v31, 0.0  ;;  %v1236_v35 = vadd.f32 %v2991_v6, %v1235_v33 }
 0x196   :  { %v1237_v37 = vpop.f32.mrf.mxu0  ;;  %v1526_v39 = vpop.f32.mrf.mxu1 }
 0x197   :  { %v1525_v38 = vadd.f32 %v1524_v36, %v1236_v35  ;;  %1778 = vxpose.xlu1.b32.cont [11/16] %v1698_v34, 128 }
 0x198   :  { %v1240_v40 = vpop.f32.mrf.mxu0  ;;  %v1529_v43 = vpop.f32.mrf.mxu1 }
 0x199   :  { %v1699_v41 = vmax.f32 %v1525_v38, 0.0  ;;  %v1241_v42 = vadd.f32 %v2991_v6, %v1240_v40 }
 0x19a   :  { %v1242_v44 = vpop.f32.mrf.mxu0  ;;  %v1531_v46 = vpop.f32.mrf.mxu1 }
 0x19b   :  { %v1530_v45 = vadd.f32 %v1529_v43, %v1241_v42  ;;  %1779 = vxpose.xlu1.b32.cont [12/16] %v1699_v41, 128 }
 0x19c   :  { %v1243_v47 = vpop.f32.mrf.mxu0  ;;  %v1532_v50 = vpop.f32.mrf.mxu1 }
 0x19d   :  { %v1700_v48 = vmax.f32 %v1530_v45, 0.0  ;;  %v1244_v49 = vadd.f32 %v2991_v6, %v1243_v47 }
 0x19e   :  { %v1245_v51 = vpop.f32.mrf.mxu0  ;;  %v1534_v53 = vpop.f32.mrf.mxu1 }
 0x19f   :  { %v1533_v52 = vadd.f32 %v1532_v50, %v1244_v49  ;;  %1780 = vxpose.xlu1.b32.cont [13/16] %v1700_v48, 128 }
 0x1a0   :  { %v1248_v54 = vpop.f32.mrf.mxu0  ;;  %v1537_v57 = vpop.f32.mrf.mxu1 }
 0x1a1   :  { %v1701_v55 = vmax.f32 %v1533_v52, 0.0  ;;  %v1249_v56 = vadd.f32 %v2991_v6, %v1248_v54 }
 0x1a2   :  { %v1250_v58 = vpop.f32.mrf.mxu0  ;;  %v1539_v60 = vpop.f32.mrf.mxu1 }
 0x1a3   :  { %v1538_v59 = vadd.f32 %v1537_v57, %v1249_v56  ;;  %1781 = vxpose.xlu1.b32.cont [14/16] %v1701_v55, 128 }
 0x1a4   :  { %v1251_v61 = vpop.f32.mrf.mxu0  ;;  %v1540_v0 = vpop.f32.mrf.mxu1 }
 0x1a5   :  { %v1702_v62 = vmax.f32 %v1538_v59, 0.0  ;;  %v1252_v63 = vadd.f32 %v2991_v6, %v1251_v61 }
 0x1a6   :  { %v1253_v1 = vpop.f32.mrf.mxu0  ;;  %v1542_v3 = vpop.f32.mrf.mxu1 }
 0x1a7   :  { %v1541_v2 = vadd.f32 %v1540_v0, %v1252_v63  ;;  %1782 = vxpose.xlu1.b32.cont [15/16] %v1702_v62, 128 }
 0x1a8   :  { %v1256_v4 = vpop.f32.mrf.mxu0  ;;  %v1545_v8 = vpop.f32.mrf.mxu1 }
 0x1a9   :  { %v1703_v5 = vmax.f32 %v1541_v2, 0.0  ;;  %v1257_v7 = vadd.f32 %v2991_v6, %v1256_v4 }
 0x1aa   :  { %v1258_v9 = vpop.f32.mrf.mxu0  ;;  %v1547_v11 = vpop.f32.mrf.mxu1 }
 0x1ab   :  { %v1546_v10 = vadd.f32 %v1545_v8, %v1257_v7  ;;  %1783 = vxpose.xlu1.b32.end [16/16] %v1703_v5, 128  ;;  %v3026_v12 = vpop.trf.xlu0 }
 0x1ac   :  { %v1259_v13 = vpop.f32.mrf.mxu0  ;;  %v1548_v16 = vpop.f32.mrf.mxu1 }
 0x1ad   :  { %v1704_v14 = vmax.f32 %v1546_v10, 0.0  ;;  %v1260_v15 = vadd.f32 %v2991_v6, %v1259_v13 }
 0x1ae   :  { %v1261_v17 = vpop.f32.mrf.mxu0  ;;  %v1550_v19 = vpop.f32.mrf.mxu1 }
 0x1af   :  { %v1549_v18 = vadd.f32 %v1548_v16, %v1260_v15  ;;  %1968 = vxpose.xlu0.b32.start [1/16] %v1704_v14, 128  ;;  %v3029_v20 = vpop.trf.xlu0 }
 0x1b0   :  { %v1264_v21 = vpop.f32.mrf.mxu0  ;;  %v1553_v24 = vpop.f32.mrf.mxu1 }
 0x1b1   :  { %v1705_v22 = vmax.f32 %v1549_v18, 0.0  ;;  %v1265_v23 = vadd.f32 %v2991_v6, %v1264_v21 }
 0x1b2   :  { %v1266_v25 = vpop.f32.mrf.mxu0  ;;  %v1555_v27 = vpop.f32.mrf.mxu1 }
 0x1b3   :  { %v1554_v26 = vadd.f32 %v1553_v24, %v1265_v23  ;;  %1969 = vxpose.xlu0.b32.cont [2/16] %v1705_v22, 128  ;;  %v3032_v28 = vpop.trf.xlu0  ;;  %v1800_v22 = vmul.f32 0.5, %v3026_v12 }
 0x1b4   :  { %v1267_v29 = vpop.f32.mrf.mxu0  ;;  %v1556_v32 = vpop.f32.mrf.mxu1 }
 0x1b5   :  { %v1706_v30 = vmax.f32 %v1554_v26, 0.0  ;;  %v1268_v31 = vadd.f32 %v2991_v6, %v1267_v29 }
 0x1b6   :  { %v1269_v33 = vpop.f32.mrf.mxu0  ;;  %v1558_v35 = vpop.f32.mrf.mxu1 }
 0x1b7   :  { %v1557_v34 = vadd.f32 %v1556_v32, %v1268_v31  ;;  %1970 = vxpose.xlu0.b32.cont [3/16] %v1706_v30, 128  ;;  %v3035_v36 = vpop.trf.xlu0  ;;  %v1802_v33 = vmul.f32 0.5, %v3029_v20 }
 0x1b8   :  { %v1272_v37 = vpop.f32.mrf.mxu0  ;;  %v1561_v40 = vpop.f32.mrf.mxu1 }
 0x1b9   :  { %v1707_v38 = vmax.f32 %v1557_v34, 0.0  ;;  %v1273_v39 = vadd.f32 %v2991_v6, %v1272_v37 }
 0x1ba   :  { %v1274_v41 = vpop.f32.mrf.mxu0  ;;  %v1563_v43 = vpop.f32.mrf.mxu1 }
 0x1bb   :  { %v1562_v42 = vadd.f32 %v1561_v40, %v1273_v39  ;;  %1971 = vxpose.xlu0.b32.cont [4/16] %v1707_v38, 128  ;;  %v1756_v44 = vpop.trf.xlu0  ;;  %v1804_v43 = vmul.f32 0.5, %v3032_v28 }
 0x1bc   :  { %v1275_v45 = vpop.f32.mrf.mxu0  ;;  %v1564_v48 = vpop.f32.mrf.mxu1  ;;  %v1808_v16 = vmul.f32 0.5, %v1756_v44 }
 0x1bd   :  { %v1708_v46 = vmax.f32 %v1562_v42, 0.0  ;;  %v1276_v47 = vadd.f32 %v2991_v6, %v1275_v45 }
 0x1be   :  { %v1277_v49 = vpop.f32.mrf.mxu0  ;;  %v1566_v51 = vpop.f32.mrf.mxu1  ;;  %2632 = vtanh.f32 %v1808_v16 }
 0x1bf   :  { %v1565_v50 = vadd.f32 %v1564_v48, %v1276_v47  ;;  %1972 = vxpose.xlu0.b32.cont [5/16] %v1708_v46, 128  ;;  %v1757_v52 = vpop.trf.xlu0  ;;  %2634 = vtanh.f32 %v1800_v22 }
 0x1c0   :  { %v1280_v53 = vpop.f32.mrf.mxu0  ;;  %v1569_v56 = vpop.f32.mrf.mxu1  ;;  %v1810_v25 = vmul.f32 0.5, %v1757_v52  ;;  %v1806_v52 = vmul.f32 0.5, %v3035_v36 }
 0x1c1   :  { %v1709_v54 = vmax.f32 %v1565_v50, 0.0  ;;  %v1281_v55 = vadd.f32 %v2991_v6, %v1280_v53 }
 0x1c2   :  { %v1282_v57 = vpop.f32.mrf.mxu0  ;;  %v1571_v59 = vpop.f32.mrf.mxu1  ;;  %2636 = vtanh.f32 %v1810_v25 }
 0x1c3   :  { %v1570_v58 = vadd.f32 %v1569_v56, %v1281_v55  ;;  %1973 = vxpose.xlu0.b32.cont [6/16] %v1709_v54, 128  ;;  %v1758_v60 = vpop.trf.xlu0  ;;  %2638 = vtanh.f32 %v1802_v33 }
 0x1c4   :  { %v1283_v61 = vpop.f32.mrf.mxu0  ;;  %v1572_v0 = vpop.f32.mrf.mxu1  ;;  %v1812_v38 = vmul.f32 0.5, %v1758_v60 }
 0x1c5   :  { %v1710_v62 = vmax.f32 %v1570_v58, 0.0  ;;  %v1284_v63 = vadd.f32 %v2991_v6, %v1283_v61 }
 0x1c6   :  { %v1285_v1 = vpop.f32.mrf.mxu0  ;;  %v1574_v3 = vpop.f32.mrf.mxu1  ;;  %2640 = vtanh.f32 %v1812_v38 }
 0x1c7   :  { %v1573_v2 = vadd.f32 %v1572_v0, %v1284_v63  ;;  %1974 = vxpose.xlu0.b32.cont [7/16] %v1710_v62, 128  ;;  %v1759_v4 = vpop.trf.xlu0  ;;  %2642 = vtanh.f32 %v1804_v43 }
 0x1c8   :  { %v1288_v5 = vpop.f32.mrf.mxu0  ;;  %v1577_v9 = vpop.f32.mrf.mxu1  ;;  %v1814_v20 = vmul.f32 0.5, %v1759_v4 }
 0x1c9   :  { %v1711_v7 = vmax.f32 %v1573_v2, 0.0  ;;  %v1289_v8 = vadd.f32 %v2991_v6, %v1288_v5 }
 0x1ca   :  { %v1290_v10 = vpop.f32.mrf.mxu0  ;;  %v1579_v13 = vpop.f32.mrf.mxu1  ;;  %2644 = vtanh.f32 %v1814_v20 }
 0x1cb   :  { %v1578_v11 = vadd.f32 %v1577_v9, %v1289_v8  ;;  %1975 = vxpose.xlu0.b32.cont [8/16] %v1711_v7, 128  ;;  %v3042_v14 = vpop.trf.xlu0  ;;  %v2633_v56 = vpop.eup %2632 }
 0x1cc   :  { %v1291_v15 = vpop.f32.mrf.mxu0  ;;  %v1580_v19 = vpop.f32.mrf.mxu1  ;;  %v1856_v2 = vmul.f32 0.5, %v2633_v56  ;;  %v1816_v7 = vmul.f32 0.5, %v3042_v14 }
 0x1cd   :  { %v1712_v17 = vmax.f32 %v1578_v11, 0.0  ;;  %v1292_v18 = vadd.f32 %v2991_v6, %v1291_v15  ;;  %v2635_v61 = vpop.eup %2634 }
 0x1ce   :  { %v1293_v21 = vpop.f32.mrf.mxu0  ;;  %v1582_v24 = vpop.f32.mrf.mxu1  ;;  %v1848_v9 = vmul.f32 0.5, %v2635_v61 }
 0x1cf   :  { %v1581_v23 = vadd.f32 %v1580_v19, %v1292_v18  ;;  %1976 = vxpose.xlu0.b32.cont [9/16] %v1712_v17, 128  ;;  %v3046_v26 = vpop.trf.xlu0  ;;  %v2637_v36 = vpop.eup %2636  ;;  %v1880_v18 = vadd.f32 0.5, %v1856_v2  ;;  %v1904_v24 = vld [vmem:[#allocation5] sm:$0xff] }
 0x1d0   :  { %v1296_v27 = vpop.f32.mrf.mxu0  ;;  %v1585_v31 = vpop.f32.mrf.mxu1  ;;  %v1858_v15 = vmul.f32 0.5, %v2637_v36  ;;  %v1818_v14 = vmul.f32 0.5, %v3046_v26 }
 0x1d1   :  { %v1713_v29 = vmax.f32 %v1581_v23, 0.0  ;;  %v1297_v30 = vadd.f32 %v2991_v6, %v1296_v27  ;;  %v2639_v10 = vpop.eup %2638  ;;  %v1872_v27 = vadd.f32 0.5, %v1848_v9  ;;  %v1912_v38 = vmul.f32 %v1904_v24, %v1880_v18 }
 0x1d2   :  { %v1298_v32 = vpop.f32.mrf.mxu0  ;;  %v1587_v35 = vpop.f32.mrf.mxu1  ;;  %v1882_v33 = vadd.f32 0.5, %v1858_v15 }
 0x1d3   :  { %v1586_v34 = vadd.f32 %v1585_v31, %v1297_v30  ;;  %1977 = vxpose.xlu0.b32.cont [10/16] %v1713_v29, 128  ;;  %v3050_v12 = vpop.trf.xlu0  ;;  %v2641_v19 = vpop.eup %2640  ;;  %v1850_v29 = vmul.f32 0.5, %v2639_v10 }
 0x1d4   :  { %v1299_v37 = vpop.f32.mrf.mxu0  ;;  %v1588_v41 = vpop.f32.mrf.mxu1 }
 0x1d5   :  { %v1714_v39 = vmax.f32 %v1586_v34, 0.0  ;;  %v1300_v40 = vadd.f32 %v2991_v6, %v1299_v37  ;;  %v2643_v30 = vpop.eup %2642  ;;  %v1874_v20 = vadd.f32 0.5, %v1850_v29 }
 0x1d6   :  { %v1301_v42 = vpop.f32.mrf.mxu0  ;;  %v1590_v45 = vpop.f32.mrf.mxu1 }
 0x1d7   :  { %v1589_v44 = vadd.f32 %v1588_v41, %v1300_v40  ;;  %1978 = vxpose.xlu0.b32.cont [11/16] %v1714_v39, 128  ;;  %v3054_v46 = vpop.trf.xlu0  ;;  %v2645_v35 = vpop.eup %2644  ;;  %v1906_v39 = vld [vmem:[#allocation5 + $0x10] sm:$0xff]  ;;  %v1860_v40 = vmul.f32 0.5, %v2641_v19  ;;  %v1820_v41 = vmul.f32 0.5, %v3050_v12 }
 0x1d8   :  { %v1304_v47 = vpop.f32.mrf.mxu0  ;;  %v1593_v50 = vpop.f32.mrf.mxu1  ;;  %v1822_v61 = vmul.f32 0.5, %v3054_v46 }
 0x1d9   :  { %v1715_v48 = vmax.f32 %v1589_v44, 0.0  ;;  %v1305_v49 = vadd.f32 %v2991_v6, %v1304_v47  ;;  %v1852_v47 = vmul.f32 0.5, %v2643_v30  ;;  %v1884_v12 = vadd.f32 0.5, %v1860_v40 }
 0x1da   :  { %v1306_v51 = vpop.f32.mrf.mxu0  ;;  %v1595_v54 = vpop.f32.mrf.mxu1 }
 0x1db   :  { %v1594_v53 = vadd.f32 %v1593_v50, %v1305_v49  ;;  %1979 = vxpose.xlu0.b32.cont [12/16] %v1715_v48, 128  ;;  %v1764_v28 = vpop.trf.xlu0 }
 0x1dc   :  { %v1307_v55 = vpop.f32.mrf.mxu0  ;;  %2646 = vtanh.f32 %v1764_v28  ;;  %v1596_v59 = vpop.f32.mrf.mxu1  ;;  %v1862_v28 = vmul.f32 0.5, %v2645_v35 }
 0x1dd   :  { %v1716_v57 = vmax.f32 %v1594_v53, 0.0  ;;  %v1308_v58 = vadd.f32 %v2991_v6, %v1307_v55  ;;  %2648 = vtanh.f32 %v1806_v52  ;;  %v1914_v53 = vmul.f32 %v1906_v39, %v1882_v33 }
 0x1de   :  { %v1309_v60 = vpop.f32.mrf.mxu0  ;;  %v1598_v63 = vpop.f32.mrf.mxu1 }
 0x1df   :  { %v1597_v62 = vadd.f32 %v1596_v59, %v1308_v58  ;;  %1980 = vxpose.xlu0.b32.cont [13/16] %v1716_v57, 128  ;;  %v1765_v0 = vpop.trf.xlu0  ;;  %v3070_v57 = vld [vmem:[%s3131_s3] ss:$0 sm:$0xff]  ;;  %v1876_v63 = vadd.f32 0.5, %v1852_v47  ;;  %s2909_s3 = smov [#allocation9]  }
 0x1e0   :  { %v1312_v1 = vpop.f32.mrf.mxu0  ;;  %2650 = vtanh.f32 %v1765_v0  ;;  %v1601_v5 = vpop.f32.mrf.mxu1  ;;  %v1908_v60 = vld [vmem:[#allocation5 + $0x20] sm:$0xff]  ;;  %s2220_s13 = sshll.u32 %s2909_s3, 4  ;;  %s2221_s13 = int_to_ptr.vmem [resolvable:$true] %s2220_s13 }
 0x1e1   :  { %v1717_v3 = vmax.f32 %v1597_v62, 0.0  ;;  %v1313_v4 = vadd.f32 %v2991_v6, %v1312_v1  ;;  %s2853_s14 = scalar_lea.vmem %s2221_s13, 2048  ;;  %p2858_p2 = scmp.lt.s32.totalorder %s2221_s13, %s2221_s13 }
 0x1e2   :  { %v1314_v8 = vpop.f32.mrf.mxu0  ;;  %v1603_v13 = vpop.f32.mrf.mxu1  ;;  %p2854_p1 = scmp.ne.s32.totalorder %s2221_s13, %s2853_s14  ;;  %p2859_p3 = scmp.lt.s32.totalorder %s2853_s14, %s2853_s14 }
 0x1e3   :  { %v1602_v11 = vadd.f32 %v1601_v5, %v1313_v4  ;;  %1981 = vxpose.xlu0.b32.cont [14/16] %v1717_v3, 128  ;;  %v1766_v16 = vpop.trf.xlu0  ;;  %v1916_v5 = vmul.f32 %v1908_v60, %v1884_v12  ;;  %v1910_v13 = vld [vmem:[#allocation5 + $0x30] sm:$0xff] }
 0x1e4   :  { %v1315_v17 = vpop.f32.mrf.mxu0  ;;  %2652 = vtanh.f32 %v1766_v16  ;;  %v1604_v23 = vpop.f32.mrf.mxu1  ;;  %p2860_p4 = por %p2859_p3, %p2858_p2 }
 0x1e5   :  { %v1718_v21 = vmax.f32 %v1602_v11, 0.0  ;;  %v1316_v22 = vadd.f32 %v2991_v6, %v1315_v17  ;;  %2654 = vtanh.f32 %v1816_v7  ;;  %v1886_v7 = vadd.f32 0.5, %v1862_v28 }
 0x1e6   :  { %v1317_v25 = vpop.f32.mrf.mxu0  ;;  %v1606_v32 = vpop.f32.mrf.mxu1  ;;  %p2861_p5 = pnand %p2860_p4, %p2854_p1 }
 0x1e7   :  { %v1605_v31 = vadd.f32 %v1604_v23, %v1316_v22  ;;  %1982 = vxpose.xlu0.b32.cont [15/16] %v1718_v21, 128  ;;  %v1767_v34 = vpop.trf.xlu0  ;;  %v1918_v24 = vmul.f32 %v1910_v13, %v1886_v7 }
 0x1e8   :  { %v1320_v37 = vpop.f32.mrf.mxu0  ;;  %2656 = vtanh.f32 %v1767_v34  ;;  %v1609_v44 = vpop.f32.mrf.mxu1 }
 0x1e9   :  { %v2647_v42 = vpop.eup %2646  ;;  %v1719_v43 = vmax.f32 %v1605_v31, 0.0  ;;  %v1321_v26 = vadd.f32 %v2991_v6, %v1320_v37  ;;  %2658 = vtanh.f32 %v1818_v14 }
 0x1ea   :  { %v1322_v45 = vpop.f32.mrf.mxu0  ;;  %v1920_v48 = vmul.f32 %v2647_v42, %v1872_v27  ;;  %v2649_v49 = vpop.eup %2648  ;;  %2660 = vtanh.f32 %v1820_v41 }
 0x1eb   :  { %v1610_v50 = vadd.f32 %v1609_v44, %v1321_v26  ;;  %v1611_v51 = vpop.f32.mrf.mxu1  ;;  %1983 = vxpose.xlu0.b32.end [16/16] %v1719_v43, 128  ;;  %v3065_v52 = vpop.trf.xlu1  ;;  %v1854_v0 = vmul.f32 0.5, %v2649_v49 }
 0x1ec   :  { %v1323_v54 = vpop.f32.mrf.mxu0  ;;  %v1928_v55 = vadd.f32 %v1920_v48, %v1912_v38 }
 0x1ed   :  { %v2651_v56 = vpop.eup %2650  ;;  %v1720_v6 = vmax.f32 %v1610_v50, 0.0  ;;  %v1324_v58 = vadd.f32 %v3070_v57, %v1323_v54  ;;  %v1612_v59 = vpop.f32.mrf.mxu1  ;;  %v1878_v17 = vadd.f32 0.5, %v1854_v0 }
 0x1ee   :  { %v1325_v62 = vpop.f32.mrf.mxu0  ;;  %1960 = vst [vmem:[#allocation9] sm:$0xff] %v1928_v55  ;;  %v1922_v36 = vmul.f32 %v2651_v56, %v1874_v20  ;;  %2662 = vtanh.f32 %v1928_v55 }
 0x1ef   :  { %v1613_v1 = vadd.f32 %v1612_v59, %v1324_v58  ;;  %v1614_v2 = vpop.f32.mrf.mxu1  ;;  %2000 = vxpose.xlu1.b32.start [1/16] %v1720_v6, 128  ;;  %v3074_v3 = vpop.trf.xlu1  ;;  %2664 = vtanh.f32 %v1822_v61 }
 0x1f0   :  { %v1328_v4 = vpop.f32.mrf.mxu0  ;;  %v1930_v8 = vadd.f32 %v1922_v36, %v1914_v53 }
 0x1f1   :  { %v2653_v9 = vpop.eup %2652  ;;  %v1721_v10 = vmax.f32 %v1613_v1, 0.0  ;;  %v1329_v11 = vadd.f32 %v3070_v57, %v1328_v4  ;;  %v1617_v46 = vpop.f32.mrf.mxu1 }
 0x1f2   :  { %v2655_v15 = vpop.eup %2654  ;;  %v1330_v16 = vpop.f32.mrf.mxu0  ;;  %1962 = vst [vmem:[#allocation9 + $0x10] sm:$0xff] %v1930_v8  ;;  %v1924_v18 = vmul.f32 %v2653_v9, %v1876_v63  ;;  %2666 = vtanh.f32 %v1930_v8 }
 0x1f3   :  { %v1618_v19 = vadd.f32 %v1617_v46, %v1329_v11  ;;  %v1619_v21 = vpop.f32.mrf.mxu1  ;;  %2001 = vxpose.xlu1.b32.cont [2/16] %v1721_v10, 128  ;;  %v3077_v22 = vpop.trf.xlu1  ;;  %v1864_v31 = vmul.f32 0.5, %v2655_v15 }
 0x1f4   :  { %v1331_v23 = vpop.f32.mrf.mxu0  ;;  %v1932_v14 = vadd.f32 %v1924_v18, %v1916_v5 }
 0x1f5   :  { %v2657_v25 = vpop.eup %2656  ;;  %v1722_v27 = vmax.f32 %v1618_v19, 0.0  ;;  %v1332_v29 = vadd.f32 %v3070_v57, %v1331_v23  ;;  %v1620_v30 = vpop.f32.mrf.mxu1  ;;  %v1888_v44 = vadd.f32 0.5, %v1864_v31 }
 0x1f6   :  { %v2659_v32 = vpop.eup %2658  ;;  %v1333_v33 = vpop.f32.mrf.mxu0  ;;  %1964 = vst [vmem:[#allocation9 + $0x20] sm:$0xff] %v1932_v14  ;;  %v1926_v34 = vmul.f32 %v2657_v25, %v1878_v17  ;;  %2668 = vtanh.f32 %v1932_v14 }
 0x1f7   :  { %v1621_v35 = vadd.f32 %v1620_v30, %v1332_v29  ;;  %v1622_v37 = vpop.f32.mrf.mxu1  ;;  %2002 = vxpose.xlu1.b32.cont [3/16] %v1722_v27, 128  ;;  %v3080_v38 = vpop.trf.xlu1  ;;  %v1866_v45 = vmul.f32 0.5, %v2659_v32 }
 0x1f8   :  { %v1336_v39 = vpop.f32.mrf.mxu0  ;;  %v1934_v40 = vadd.f32 %v1926_v34, %v1918_v24  ;;  %v2661_v41 = vpop.eup %2660 }
 0x1f9   :  { %v1723_v42 = vmax.f32 %v1621_v35, 0.0  ;;  %v1337_v43 = vadd.f32 %v3070_v57, %v1336_v39  ;;  %v1625_v26 = vpop.f32.mrf.mxu1  ;;  %v1868_v53 = vmul.f32 0.5, %v2661_v41  ;;  %v1890_v55 = vadd.f32 0.5, %v1866_v45 }
 0x1fa   :  { %v1338_v20 = vpop.f32.mrf.mxu0  ;;  %1966 = vst [vmem:[#allocation9 + $0x30] sm:$0xff] %v1934_v40  ;;  %2670 = vtanh.f32 %v1934_v40 }
 0x1fb   :  { %v1626_v47 = vadd.f32 %v1625_v26, %v1337_v43  ;;  %v1627_v48 = vpop.f32.mrf.mxu1  ;;  %2003 = vxpose.xlu1.b32.cont [4/16] %v1723_v42, 128  ;;  %v1788_v49 = vpop.trf.xlu1  ;;  %v1892_v0 = vadd.f32 0.5, %v1868_v53  ;;  %v1801_v43 = vmul.f32 0.5, %v3065_v52 }
 0x1fc   :  { %v2663_v50 = vpop.eup %2662  ;;  %v1339_v51 = vpop.f32.mrf.mxu0  ;;  %v1809_v39 = vmul.f32 0.5, %v1788_v49  ;;  %v1803_v49 = vmul.f32 0.5, %v3074_v3 }
 0x1fd   :  { %v1724_v54 = vmax.f32 %v1626_v47, 0.0  ;;  %v1340_v12 = vadd.f32 %v3070_v57, %v1339_v51  ;;  %v1628_v28 = vpop.f32.mrf.mxu1  ;;  %v1944_v56 = vmul.f32 %v2663_v50, %v1888_v44  ;;  %v2665_v6 = vpop.eup %2664 }
 0x1fe   :  { %v1341_v58 = vpop.f32.mrf.mxu0  ;;  %v1870_v4 = vmul.f32 0.5, %v2665_v6  ;;  %2672 = vtanh.f32 %v1809_v39 }
 0x1ff   :  { %v1629_v59 = vadd.f32 %v1628_v28, %v1340_v12  ;;  %v1630_v60 = vpop.f32.mrf.mxu1  ;;  %2004 = vxpose.xlu1.b32.cont [5/16] %v1724_v54, 128  ;;  %v1789_v61 = vpop.trf.xlu1  ;;  %1952 = vst [vmem:[#allocation8] sm:$0xff] %v1944_v56  ;;  %2674 = vtanh.f32 %v1801_v43  ;;  %v1905_v43 = vld [vmem:[#allocation5 + $0x8] sm:$0xff] }
 0x200   :  { %v2667_v62 = vpop.eup %2666  ;;  %v1344_v63 = vpop.f32.mrf.mxu0  ;;  %v1894_v17 = vadd.f32 0.5, %v1870_v4  ;;  %v1811_v20 = vmul.f32 0.5, %v1789_v61  ;;  %v1805_v60 = vmul.f32 0.5, %v3077_v22 }
 0x201   :  { %v1725_v36 = vmax.f32 %v1629_v59, 0.0  ;;  %v1345_v1 = vadd.f32 %v3070_v57, %v1344_v63  ;;  %v1633_v2 = vpop.f32.mrf.mxu1  ;;  %v1946_v5 = vmul.f32 %v2667_v62, %v1890_v55 }
 0x202   :  { %v1346_v7 = vpop.f32.mrf.mxu0  ;;  %2676 = vtanh.f32 %v1811_v20 }
 0x203   :  { %v1634_v8 = vadd.f32 %v1633_v2, %v1345_v1  ;;  %v1635_v9 = vpop.f32.mrf.mxu1  ;;  %2005 = vxpose.xlu1.b32.cont [6/16] %v1725_v36, 128  ;;  %v1790_v10 = vpop.trf.xlu1  ;;  %1954 = vst [vmem:[#allocation8 + $0x10] sm:$0xff] %v1946_v5  ;;  %2678 = vtanh.f32 %v1803_v49  ;;  %v1807_v5 = vmul.f32 0.5, %v3080_v38 }
 0x204   :  { %v2669_v11 = vpop.eup %2668  ;;  %v1347_v46 = vpop.f32.mrf.mxu0  ;;  %v1813_v52 = vmul.f32 0.5, %v1790_v10 }
 0x205   :  { %v1726_v13 = vmax.f32 %v1634_v8, 0.0  ;;  %v1348_v15 = vadd.f32 %v3070_v57, %v1347_v46  ;;  %v1636_v16 = vpop.f32.mrf.mxu1  ;;  %v1948_v18 = vmul.f32 %v2669_v11, %v1892_v0 }
 0x206   :  { %v1349_v19 = vpop.f32.mrf.mxu0  ;;  %2680 = vtanh.f32 %v1813_v52 }
 0x207   :  { %v1637_v21 = vadd.f32 %v1636_v16, %v1348_v15  ;;  %v1638_v23 = vpop.f32.mrf.mxu1  ;;  %2006 = vxpose.xlu1.b32.cont [7/16] %v1726_v13, 128  ;;  %v1791_v24 = vpop.trf.xlu1  ;;  %1956 = vst [vmem:[#allocation8 + $0x20] sm:$0xff] %v1948_v18  ;;  %2682 = vtanh.f32 %v1805_v60 }
 0x208   :  { %v2671_v14 = vpop.eup %2670  ;;  %v1352_v25 = vpop.f32.mrf.mxu0  ;;  %v1815_v3 = vmul.f32 0.5, %v1791_v24 }
 0x209   :  { %v1727_v27 = vmax.f32 %v1637_v21, 0.0  ;;  %v1353_v29 = vadd.f32 %v3070_v57, %v1352_v25  ;;  %v1641_v30 = vpop.f32.mrf.mxu1  ;;  %v1950_v31 = vmul.f32 %v2671_v14, %v1894_v17 }
 0x20a   :  { %v1354_v32 = vpop.f32.mrf.mxu0  ;;  %2684 = vtanh.f32 %v1815_v3 }
 0x20b   :  { %v1642_v33 = vadd.f32 %v1641_v30, %v1353_v29  ;;  %v1643_v34 = vpop.f32.mrf.mxu1  ;;  %2007 = vxpose.xlu1.b32.cont [8/16] %v1727_v27, 128  ;;  %v3087_v35 = vpop.trf.xlu1  ;;  %1958 = vst [vmem:[#allocation8 + $0x30] sm:$0xff] %v1950_v31 }
 0x20c   :  { %v1355_v37 = vpop.f32.mrf.mxu0  ;;  %v2673_v11 = vpop.eup %2672  ;;  %v1817_v38 = vmul.f32 0.5, %v3087_v35 }
 0x20d   :  { %v1728_v40 = vmax.f32 %v1642_v33, 0.0  ;;  %v1356_v41 = vadd.f32 %v3070_v57, %v1355_v37  ;;  %v1644_v42 = vpop.f32.mrf.mxu1  ;;  %v2675_v17 = vpop.eup %2674  ;;  %v1857_v24 = vmul.f32 0.5, %v2673_v11 }
 0x20e   :  { %v1357_v26 = vpop.f32.mrf.mxu0  ;;  %v1849_v30 = vmul.f32 0.5, %v2675_v17 }
 0x20f   :  { %v1645_v44 = vadd.f32 %v1644_v42, %v1356_v41  ;;  %v1646_v45 = vpop.f32.mrf.mxu1  ;;  %2008 = vxpose.xlu1.b32.cont [9/16] %v1728_v40, 128  ;;  %v3091_v47 = vpop.trf.xlu1  ;;  %v1881_v41 = vadd.f32 0.5, %v1857_v24 }
 0x210   :  { %v1360_v48 = vpop.f32.mrf.mxu0  ;;  %v2677_v23 = vpop.eup %2676  ;;  %v1819_v39 = vmul.f32 0.5, %v3091_v47  ;;  %v1873_v20 = vadd.f32 0.5, %v1849_v30 }
 0x211   :  { %v1729_v50 = vmax.f32 %v1645_v44, 0.0  ;;  %v1361_v51 = vadd.f32 %v3070_v57, %v1360_v48  ;;  %v1649_v53 = vpop.f32.mrf.mxu1  ;;  %v2679_v32 = vpop.eup %2678  ;;  %v1859_v33 = vmul.f32 0.5, %v2677_v23  ;;  %v1913_v52 = vmul.f32 %v1905_v43, %v1881_v41 }
 0x212   :  { %v1362_v54 = vpop.f32.mrf.mxu0  ;;  %v1851_v48 = vmul.f32 0.5, %v2679_v32 }
 0x213   :  { %v1650_v12 = vadd.f32 %v1649_v53, %v1361_v51  ;;  %v1651_v28 = vpop.f32.mrf.mxu1  ;;  %2009 = vxpose.xlu1.b32.cont [10/16] %v1729_v50, 128  ;;  %v3095_v55 = vpop.trf.xlu1  ;;  %v1883_v53 = vadd.f32 0.5, %v1859_v33 }
 0x214   :  { %v1363_v56 = vpop.f32.mrf.mxu0  ;;  %v2681_v40 = vpop.eup %2680 }
 0x215   :  { %v1730_v6 = vmax.f32 %v1650_v12, 0.0  ;;  %v1364_v58 = vadd.f32 %v3070_v57, %v1363_v56  ;;  %v1652_v59 = vpop.f32.mrf.mxu1  ;;  %v2683_v51 = vpop.eup %2682  ;;  %v1861_v49 = vmul.f32 0.5, %v2681_v40  ;;  %v1907_v56 = vld [vmem:[#allocation5 + $0x18] sm:$0xff] }
 0x216   :  { %v1365_v61 = vpop.f32.mrf.mxu0  ;;  %v1853_v60 = vmul.f32 0.5, %v2683_v51 }
 0x217   :  { %v1653_v62 = vadd.f32 %v1652_v59, %v1364_v58  ;;  %v1654_v63 = vpop.f32.mrf.mxu1  ;;  %2010 = vxpose.xlu1.b32.cont [11/16] %v1730_v6, 128  ;;  %v3099_v0 = vpop.trf.xlu1  ;;  %v1821_v6 = vmul.f32 0.5, %v3095_v55  ;;  %v1875_v59 = vadd.f32 0.5, %v1851_v48  ;;  %v1885_v3 = vadd.f32 0.5, %v1861_v49 }
 0x218   :  { %v1368_v36 = vpop.f32.mrf.mxu0  ;;  %v2685_v28 = vpop.eup %2684  ;;  %v1915_v63 = vmul.f32 %v1907_v56, %v1883_v53  ;;  %v1877_v55 = vadd.f32 0.5, %v1853_v60 }
 0x219   :  { %v1731_v1 = vmax.f32 %v1653_v62, 0.0  ;;  %v1369_v2 = vadd.f32 %v3070_v57, %v1368_v36  ;;  %v1657_v4 = vpop.f32.mrf.mxu1 }
 0x21a   :  { %v1370_v7 = vpop.f32.mrf.mxu0 }
 0x21b   :  { %v1658_v8 = vadd.f32 %v1657_v4, %v1369_v2  ;;  %v1659_v9 = vpop.f32.mrf.mxu1  ;;  %2011 = vxpose.xlu1.b32.cont [12/16] %v1731_v1, 128  ;;  %v1796_v22 = vpop.trf.xlu1  ;;  %v1863_v1 = vmul.f32 0.5, %v2685_v28  ;;  %v1823_v2 = vmul.f32 0.5, %v3099_v0  ;;  %v1909_v7 = vld [vmem:[#allocation5 + $0x28] sm:$0xff] }
 0x21c   :  { %v1371_v10 = vpop.f32.mrf.mxu0  ;;  %2686 = vtanh.f32 %v1796_v22  ;;  %v1917_v11 = vmul.f32 %v1909_v7, %v1885_v3 }
 0x21d   :  { %v1732_v46 = vmax.f32 %v1658_v8, 0.0  ;;  %v1372_v13 = vadd.f32 %v3070_v57, %v1371_v10  ;;  %v1660_v15 = vpop.f32.mrf.mxu1  ;;  %2688 = vtanh.f32 %v1807_v5 }
 0x21e   :  { %v1373_v16 = vpop.f32.mrf.mxu0 }
 0x21f   :  { %v1661_v18 = vadd.f32 %v1660_v15, %v1372_v13  ;;  %v1662_v19 = vpop.f32.mrf.mxu1  ;;  %2012 = vxpose.xlu1.b32.cont [13/16] %v1732_v46, 128  ;;  %v1797_v21 = vpop.trf.xlu1  ;;  %v1887_v46 = vadd.f32 0.5, %v1863_v1  ;;  %v1911_v16 = vld [vmem:[#allocation5 + $0x38] sm:$0xff] }
 0x220   :  { %v1376_v14 = vpop.f32.mrf.mxu0  ;;  %2690 = vtanh.f32 %v1797_v21 }
 0x221   :  { %v1733_v25 = vmax.f32 %v1661_v18, 0.0  ;;  %v1377_v27 = vadd.f32 %v3070_v57, %v1376_v14  ;;  %v1665_v29 = vpop.f32.mrf.mxu1  ;;  %2692 = vtanh.f32 %v1817_v38  ;;  %v1919_v38 = vmul.f32 %v1911_v16, %v1887_v46 }
 0x222   :  { %v1378_v31 = vpop.f32.mrf.mxu0 }
 0x223   :  { %v1666_v34 = vadd.f32 %v1665_v29, %v1377_v27  ;;  %v1667_v37 = vpop.f32.mrf.mxu1  ;;  %2013 = vxpose.xlu1.b32.cont [14/16] %v1733_v25, 128  ;;  %v1798_v35 = vpop.trf.xlu1 }
 0x224   :  { %v1379_v42 = vpop.f32.mrf.mxu0  ;;  %2694 = vtanh.f32 %v1798_v35 }
 0x225   :  { %v1734_v26 = vmax.f32 %v1666_v34, 0.0  ;;  %v1380_v44 = vadd.f32 %v3070_v57, %v1379_v42  ;;  %v1668_v45 = vpop.f32.mrf.mxu1  ;;  %2696 = vtanh.f32 %v1819_v39 }
 0x226   :  { %v1381_v50 = vpop.f32.mrf.mxu0 }
 0x227   :  { %v1669_v54 = vadd.f32 %v1668_v45, %v1380_v44  ;;  %v1670_v12 = vpop.f32.mrf.mxu1  ;;  %2014 = vxpose.xlu1.b32.cont [15/16] %v1734_v26, 128  ;;  %v1799_v47 = vpop.trf.xlu1 }
 0x228   :  { %2698 = vtanh.f32 %v1799_v47 }
 0x229   :  { %v2687_v58 = vpop.eup %2686  ;;  %v1735_v57 = vmax.f32 %v1669_v54, 0.0  ;;  %2700 = vtanh.f32 %v1821_v6 }
 0x22a   :  { %v1921_v61 = vmul.f32 %v2687_v58, %v1873_v20  ;;  %v2689_v62 = vpop.eup %2688 }
 0x22b   :  { %2015 = vxpose.xlu1.b32.end [16/16] %v1735_v57, 128  ;;  %v3109_v36 = vpop.trf.xlu0  ;;  %v1855_v8 = vmul.f32 0.5, %v2689_v62 }
 0x22c   :  { %v1929_v4 = vadd.f32 %v1921_v61, %v1913_v52  ;;  %v2032_v12 = vmul.f32 0.5, %v3109_v36 }
 0x22d   :  { %v2691_v5 = vpop.eup %2690  ;;  %v1879_v17 = vadd.f32 0.5, %v1855_v8 }
 0x22e   :  { %2702 = vtanh.f32 %v1929_v4  ;;  %1961 = vst [vmem:[#allocation9 + $0x8] sm:$0xff] %v1929_v4  ;;  %v1923_v9 = vmul.f32 %v2691_v5, %v1875_v59  ;;  %v2693_v10 = vpop.eup %2692 }
 0x22f   :  { %v1985_v22 = vpop.trf.xlu0  ;;  %2704 = vtanh.f32 %v1823_v2  ;;  %v1865_v21 = vmul.f32 0.5, %v2693_v10 }
 0x230   :  { %v1931_v13 = vadd.f32 %v1923_v9, %v1915_v63  ;;  %v2034_v52 = vmul.f32 0.5, %v1985_v22  ;;  %v2137_v22 = vld [vmem:[#allocation5 + $0x40] sm:$0xff] }
 0x231   :  { %v2695_v15 = vpop.eup %2694  ;;  %v1889_v27 = vadd.f32 0.5, %v1865_v21 }
 0x232   :  { %2706 = vtanh.f32 %v1931_v13  ;;  %1963 = vst [vmem:[#allocation9 + $0x18] sm:$0xff] %v1931_v13  ;;  %v1925_v0 = vmul.f32 %v2695_v15, %v1877_v55  ;;  %v2697_v19 = vpop.eup %2696 }
 0x233   :  { %v1986_v18 = vpop.trf.xlu0  ;;  %v1867_v29 = vmul.f32 0.5, %v2697_v19 }
 0x234   :  { %v1933_v23 = vadd.f32 %v1925_v0, %v1917_v11  ;;  %v2036_v58 = vmul.f32 0.5, %v1986_v18 }
 0x235   :  { %v2699_v24 = vpop.eup %2698  ;;  %v1891_v34 = vadd.f32 0.5, %v1867_v29 }
 0x236   :  { %2708 = vtanh.f32 %v1933_v23  ;;  %1965 = vst [vmem:[#allocation9 + $0x28] sm:$0xff] %v1933_v23  ;;  %v1927_v14 = vmul.f32 %v2699_v24, %v1879_v17  ;;  %v2701_v31 = vpop.eup %2700 }
 0x237   :  { %v1987_v25 = vpop.trf.xlu0  ;;  %v1869_v37 = vmul.f32 0.5, %v2701_v31 }
 0x238   :  { %v1935_v30 = vadd.f32 %v1927_v14, %v1919_v38  ;;  %v2038_v60 = vmul.f32 0.5, %v1987_v25  ;;  %v2139_v38 = vld [vmem:[#allocation5 + $0x50] sm:$0xff] }
 0x239   :  { %v1893_v42 = vadd.f32 0.5, %v1869_v37 }
 0x23a   :  { %2710 = vtanh.f32 %v1935_v30  ;;  %1967 = vst [vmem:[#allocation9 + $0x38] sm:$0xff] %v1935_v30 }
 0x23b   :  { %v2703_v32 = vpop.eup %2702  ;;  %v1988_v33 = vpop.trf.xlu0 }
 0x23c   :  { %v1945_v39 = vmul.f32 %v2703_v32, %v1889_v27  ;;  %v2705_v35 = vpop.eup %2704  ;;  %v2040_v54 = vmul.f32 0.5, %v1988_v33 }
 0x23d   :  { %v1871_v43 = vmul.f32 0.5, %v2705_v35 }
 0x23e   :  { %1953 = vst [vmem:[#allocation8 + $0x8] sm:$0xff] %v1945_v39  ;;  %2712 = vtanh.f32 %v2040_v54 }
 0x23f   :  { %v2707_v40 = vpop.eup %2706  ;;  %v1989_v41 = vpop.trf.xlu0  ;;  %v1895_v20 = vadd.f32 0.5, %v1871_v43  ;;  %2714 = vtanh.f32 %v2032_v12 }
 0x240   :  { %v1947_v26 = vmul.f32 %v2707_v40, %v1891_v34  ;;  %v2042_v28 = vmul.f32 0.5, %v1989_v41  ;;  %v2141_v34 = vld [vmem:[#allocation5 + $0x60] sm:$0xff] }
 0x242   :  { %1955 = vst [vmem:[#allocation8 + $0x18] sm:$0xff] %v1947_v26  ;;  %2716 = vtanh.f32 %v2042_v28 }
 0x243   :  { %v2709_v44 = vpop.eup %2708  ;;  %v1990_v45 = vpop.trf.xlu0  ;;  %2718 = vtanh.f32 %v2034_v52 }
 0x244   :  { %v1949_v48 = vmul.f32 %v2709_v44, %v1893_v42  ;;  %v2044_v6 = vmul.f32 0.5, %v1990_v45  ;;  %v2143_v45 = vld [vmem:[#allocation5 + $0x70] sm:$0xff] }
 0x246   :  { %1957 = vst [vmem:[#allocation8 + $0x28] sm:$0xff] %v1949_v48  ;;  %2720 = vtanh.f32 %v2044_v6 }
 0x247   :  { %v2711_v50 = vpop.eup %2710  ;;  %v1991_v51 = vpop.trf.xlu0  ;;  %2722 = vtanh.f32 %v2036_v58 }
 0x248   :  { %v1951_v53 = vmul.f32 %v2711_v50, %v1895_v20  ;;  %v2046_v57 = vmul.f32 0.5, %v1991_v51 }
 0x24a   :  { %1959 = vst [vmem:[#allocation8 + $0x38] sm:$0xff] %v1951_v53  ;;  %2724 = vtanh.f32 %v2046_v57 }
 0x24b   :  { %v1992_v49 = vpop.trf.xlu0  ;;  %v2713_v62 = vpop.eup %2712 }
 0x24c   :  { %v2715_v63 = vpop.eup %2714  ;;  %v2088_v36 = vmul.f32 0.5, %v2713_v62  ;;  %v2048_v2 = vmul.f32 0.5, %v1992_v49 }
 0x24d   :  { %v2080_v4 = vmul.f32 0.5, %v2715_v63 }
 0x24e   :  { %v2112_v55 = vadd.f32 0.5, %v2088_v36 }
 0x24f   :  { %v1993_v47 = vpop.trf.xlu0  ;;  %v2717_v1 = vpop.eup %2716  ;;  %v2104_v11 = vadd.f32 0.5, %v2080_v4 }
 0x250   :  { %v2719_v5 = vpop.eup %2718  ;;  %v2090_v8 = vmul.f32 0.5, %v2717_v1  ;;  %v2050_v10 = vmul.f32 0.5, %v1993_v47  ;;  %v2145_v17 = vmul.f32 %v2137_v22, %v2112_v55 }
 0x251   :  { %v2082_v46 = vmul.f32 0.5, %v2719_v5 }
 0x252   :  { %v2114_v0 = vadd.f32 0.5, %v2090_v8 }
 0x253   :  { %v1994_v56 = vpop.trf.xlu0  ;;  %v2721_v9 = vpop.eup %2720  ;;  %v2106_v23 = vadd.f32 0.5, %v2082_v46 }
 0x254   :  { %v2723_v13 = vpop.eup %2722  ;;  %v2092_v18 = vmul.f32 0.5, %v2721_v9  ;;  %v2052_v21 = vmul.f32 0.5, %v1994_v56  ;;  %v2147_v29 = vmul.f32 %v2139_v38, %v2114_v0 }
 0x255   :  { %v2084_v24 = vmul.f32 0.5, %v2723_v13 }
 0x256   :  { %v2116_v30 = vadd.f32 0.5, %v2092_v18 }
 0x257   :  { %v1995_v59 = vpop.trf.xlu0  ;;  %v2725_v16 = vpop.eup %2724  ;;  %v2108_v39 = vadd.f32 0.5, %v2084_v24 }
 0x258   :  { %v2094_v31 = vmul.f32 0.5, %v2725_v16  ;;  %v2054_v37 = vmul.f32 0.5, %v1995_v59  ;;  %v2149_v42 = vmul.f32 %v2141_v34, %v2116_v30 }
 0x25a   :  { %v2118_v43 = vadd.f32 0.5, %v2094_v31 }
 0x25b   :  { %v1996_v61 = vpop.trf.xlu0 }
 0x25c   :  { %2726 = vtanh.f32 %v1996_v61  ;;  %v2151_v53 = vmul.f32 %v2143_v45, %v2118_v43 }
 0x25d   :  { %2728 = vtanh.f32 %v2038_v60 }
 0x25f   :  { %v1997_v3 = vpop.trf.xlu0 }
 0x260   :  { %2730 = vtanh.f32 %v1997_v3 }
 0x263   :  { %v1998_v7 = vpop.trf.xlu0 }
 0x264   :  { %2732 = vtanh.f32 %v1998_v7 }
 0x265   :  { %2734 = vtanh.f32 %v2048_v2 }
 0x267   :  { %v1999_v15 = vpop.trf.xlu0 }
 0x268   :  { %2736 = vtanh.f32 %v1999_v15 }
 0x269   :  { %v2727_v19 = vpop.eup %2726  ;;  %2738 = vtanh.f32 %v2050_v10 }
 0x26a   :  { %v2153_v14 = vmul.f32 %v2727_v19, %v2104_v11  ;;  %v2729_v25 = vpop.eup %2728  ;;  %2740 = vtanh.f32 %v2052_v21 }
 0x26b   :  { %v3113_v27 = vpop.trf.xlu1  ;;  %v2086_v35 = vmul.f32 0.5, %v2729_v25 }
 0x26c   :  { %v2161_v32 = vadd.f32 %v2153_v14, %v2145_v17  ;;  %v2033_v16 = vmul.f32 0.5, %v3113_v27 }
 0x26d   :  { %v2731_v33 = vpop.eup %2730  ;;  %v2110_v48 = vadd.f32 0.5, %v2086_v35 }
 0x26e   :  { %2195 = vst [vmem:[#allocation9 + $0x40] sm:$0xff] %v2161_v32  ;;  %v2155_v40 = vmul.f32 %v2731_v33, %v2106_v23  ;;  %2742 = vtanh.f32 %v2161_v32 }
 0x26f   :  { %v2017_v41 = vpop.trf.xlu1  ;;  %2744 = vtanh.f32 %v2054_v37 }
 0x270   :  { %v2163_v26 = vadd.f32 %v2155_v40, %v2147_v29  ;;  %v2035_v18 = vmul.f32 0.5, %v2017_v41 }
 0x271   :  { %v2733_v44 = vpop.eup %2732 }
 0x272   :  { %v2735_v20 = vpop.eup %2734  ;;  %2197 = vst [vmem:[#allocation9 + $0x50] sm:$0xff] %v2163_v26  ;;  %v2157_v50 = vmul.f32 %v2733_v44, %v2108_v39  ;;  %2746 = vtanh.f32 %v2163_v26 }
 0x273   :  { %v2018_v51 = vpop.trf.xlu1  ;;  %v2096_v12 = vmul.f32 0.5, %v2735_v20 }
 0x274   :  { %v2165_v49 = vadd.f32 %v2157_v50, %v2149_v42  ;;  %v2037_v38 = vmul.f32 0.5, %v2018_v51  ;;  %v2138_v42 = vld [vmem:[#allocation5 + $0x48] sm:$0xff] }
 0x275   :  { %v2737_v54 = vpop.eup %2736  ;;  %v2120_v6 = vadd.f32 0.5, %v2096_v12 }
 0x276   :  { %v2739_v47 = vpop.eup %2738  ;;  %2199 = vst [vmem:[#allocation9 + $0x60] sm:$0xff] %v2165_v49  ;;  %v2159_v28 = vmul.f32 %v2737_v54, %v2110_v48  ;;  %2748 = vtanh.f32 %v2165_v49 }
 0x277   :  { %v2019_v52 = vpop.trf.xlu1  ;;  %v2098_v58 = vmul.f32 0.5, %v2739_v47  ;;  %v2741_v57 = vpop.eup %2740 }
 0x278   :  { %v2167_v56 = vadd.f32 %v2159_v28, %v2151_v53  ;;  %v2100_v62 = vmul.f32 0.5, %v2741_v57  ;;  %v2039_v24 = vmul.f32 0.5, %v2019_v52  ;;  %v2140_v53 = vld [vmem:[#allocation5 + $0x58] sm:$0xff] }
 0x279   :  { %v2122_v61 = vadd.f32 0.5, %v2098_v58 }
 0x27a   :  { %2201 = vst [vmem:[#allocation9 + $0x70] sm:$0xff] %v2167_v56  ;;  %2750 = vtanh.f32 %v2167_v56  ;;  %v2124_v2 = vadd.f32 0.5, %v2100_v62  ;;  %v2142_v62 = vld [vmem:[#allocation5 + $0x68] sm:$0xff] }
 0x27b   :  { %v2020_v59 = vpop.trf.xlu1  ;;  %v2743_v60 = vpop.eup %2742 }
 0x27c   :  { %v2177_v63 = vmul.f32 %v2743_v60, %v2120_v6  ;;  %v2745_v3 = vpop.eup %2744  ;;  %v2041_v13 = vmul.f32 0.5, %v2020_v59 }
 0x27d   :  { %v2102_v4 = vmul.f32 0.5, %v2745_v3 }
 0x27e   :  { %2186 = vst [vmem:[#allocation8 + $0x40] sm:$0xff] %v2177_v63  ;;  %2752 = vtanh.f32 %v2041_v13 }
 0x27f   :  { %v2021_v36 = vpop.trf.xlu1  ;;  %v2747_v1 = vpop.eup %2746  ;;  %v2126_v8 = vadd.f32 0.5, %v2102_v4  ;;  %2754 = vtanh.f32 %v2033_v16 }
 0x280   :  { %v2179_v5 = vmul.f32 %v2747_v1, %v2122_v61  ;;  %v2043_v17 = vmul.f32 0.5, %v2021_v36 }
 0x282   :  { %2188 = vst [vmem:[#allocation8 + $0x50] sm:$0xff] %v2179_v5  ;;  %2756 = vtanh.f32 %v2043_v17 }
 0x283   :  { %v2022_v7 = vpop.trf.xlu1  ;;  %v2749_v55 = vpop.eup %2748  ;;  %2758 = vtanh.f32 %v2035_v18 }
 0x284   :  { %v2181_v9 = vmul.f32 %v2749_v55, %v2124_v2  ;;  %v2045_v19 = vmul.f32 0.5, %v2022_v7  ;;  %v2144_v55 = vld [vmem:[#allocation5 + $0x78] sm:$0xff] }
 0x286   :  { %2190 = vst [vmem:[#allocation8 + $0x60] sm:$0xff] %v2181_v9  ;;  %2760 = vtanh.f32 %v2045_v19 }
 0x287   :  { %v2023_v22 = vpop.trf.xlu1  ;;  %v2751_v10 = vpop.eup %2750  ;;  %2762 = vtanh.f32 %v2037_v38 }
 0x288   :  { %v2183_v11 = vmul.f32 %v2751_v10, %v2126_v8  ;;  %v2047_v23 = vmul.f32 0.5, %v2023_v22 }
 0x28a   :  { %2192 = vst [vmem:[#allocation8 + $0x70] sm:$0xff] %v2183_v11 }
 0x28b   :  { %v2024_v46 = vpop.trf.xlu1  ;;  %v2753_v25 = vpop.eup %2752 }
 0x28c   :  { %v2755_v29 = vpop.eup %2754  ;;  %v2089_v31 = vmul.f32 0.5, %v2753_v25  ;;  %v2049_v32 = vmul.f32 0.5, %v2024_v46 }
 0x28d   :  { %v2081_v34 = vmul.f32 0.5, %v2755_v29 }
 0x28e   :  { %v2113_v35 = vadd.f32 0.5, %v2089_v31 }
 0x28f   :  { %v2025_v15 = vpop.trf.xlu1  ;;  %v2757_v30 = vpop.eup %2756  ;;  %v2105_v44 = vadd.f32 0.5, %v2081_v34 }
 0x290   :  { %v2759_v37 = vpop.eup %2758  ;;  %v2091_v39 = vmul.f32 0.5, %v2757_v30  ;;  %v2051_v40 = vmul.f32 0.5, %v2025_v15  ;;  %v2146_v51 = vmul.f32 %v2138_v42, %v2113_v35 }
 0x291   :  { %v2083_v45 = vmul.f32 0.5, %v2759_v37 }
 0x292   :  { %v2115_v48 = vadd.f32 0.5, %v2091_v39 }
 0x293   :  { %v2026_v0 = vpop.trf.xlu1  ;;  %v2761_v41 = vpop.eup %2760  ;;  %v2107_v28 = vadd.f32 0.5, %v2083_v45 }
 0x294   :  { %v2763_v26 = vpop.eup %2762  ;;  %v2053_v50 = vmul.f32 0.5, %v2026_v0  ;;  %v2093_v49 = vmul.f32 0.5, %v2761_v41  ;;  %v2148_v58 = vmul.f32 %v2140_v53, %v2115_v48 }
 0x295   :  { %v2085_v52 = vmul.f32 0.5, %v2763_v26 }
 0x296   :  { %v2117_v59 = vadd.f32 0.5, %v2093_v49 }
 0x297   :  { %v2027_v21 = vpop.trf.xlu1  ;;  %v2109_v63 = vadd.f32 0.5, %v2085_v52 }
 0x298   :  { %v2055_v57 = vmul.f32 0.5, %v2027_v21  ;;  %v2150_v2 = vmul.f32 %v2142_v62, %v2117_v59 }
 0x29b   :  { %v2028_v14 = vpop.trf.xlu1 }
 0x29c   :  { %2764 = vtanh.f32 %v2028_v14 }
 0x29d   :  { %2766 = vtanh.f32 %v2047_v23 }
 0x29e   :  { %2768 = vtanh.f32 %v2039_v24 }
 0x29f   :  { %v2029_v27 = vpop.trf.xlu1 }
 0x2a0   :  { %2770 = vtanh.f32 %v2029_v27 }
 0x2a3   :  { %v2030_v33 = vpop.trf.xlu1 }
 0x2a4   :  { %2772 = vtanh.f32 %v2030_v33 }
 0x2a5   :  { %2774 = vtanh.f32 %v2049_v32 }
 0x2a7   :  { %v2031_v43 = vpop.trf.xlu1 }
 0x2a8   :  { %2776 = vtanh.f32 %v2031_v43 }
 0x2a9   :  { %v2765_v20 = vpop.eup %2764  ;;  %2778 = vtanh.f32 %v2051_v40 }
 0x2aa   :  { %v2154_v54 = vmul.f32 %v2765_v20, %v2105_v44  ;;  %v2767_v12 = vpop.eup %2766  ;;  %2780 = vtanh.f32 %v2053_v50 }
 0x2ab   :  { %v2769_v47 = vpop.eup %2768  ;;  %v2095_v60 = vmul.f32 0.5, %v2767_v12 }
 0x2ac   :  { %v2162_v56 = vadd.f32 %v2154_v54, %v2146_v51  ;;  %v2087_v3 = vmul.f32 0.5, %v2769_v47 }
 0x2ad   :  { %v2771_v6 = vpop.eup %2770  ;;  %v2119_v4 = vadd.f32 0.5, %v2095_v60 }
 0x2ae   :  { %2782 = vtanh.f32 %v2162_v56  ;;  %2196 = vst [vmem:[#allocation9 + $0x48] sm:$0xff] %v2162_v56  ;;  %v2156_v61 = vmul.f32 %v2771_v6, %v2107_v28  ;;  %v2111_v8 = vadd.f32 0.5, %v2087_v3 }
 0x2af   :  { %2784 = vtanh.f32 %v2055_v57  ;;  %v2152_v10 = vmul.f32 %v2144_v55, %v2119_v4 }
 0x2b0   :  { %v2164_v36 = vadd.f32 %v2156_v61, %v2148_v58 }
 0x2b1   :  { %v2773_v1 = vpop.eup %2772 }
 0x2b2   :  { %2786 = vtanh.f32 %v2164_v36  ;;  %2198 = vst [vmem:[#allocation9 + $0x58] sm:$0xff] %v2164_v36  ;;  %v2158_v5 = vmul.f32 %v2773_v1, %v2109_v63  ;;  %v2775_v7 = vpop.eup %2774 }
 0x2b3   :  { %v2097_v11 = vmul.f32 0.5, %v2775_v7 }
 0x2b4   :  { %v2166_v9 = vadd.f32 %v2158_v5, %v2150_v2 }
 0x2b5   :  { %v2777_v22 = vpop.eup %2776  ;;  %v2121_v17 = vadd.f32 0.5, %v2097_v11 }
 0x2b6   :  { %2788 = vtanh.f32 %v2166_v9  ;;  %2200 = vst [vmem:[#allocation9 + $0x68] sm:$0xff] %v2166_v9  ;;  %v2160_v46 = vmul.f32 %v2777_v22, %v2111_v8  ;;  %v2779_v13 = vpop.eup %2778 }
 0x2b7   :  { %v2781_v16 = vpop.eup %2780  ;;  %v2099_v0 = vmul.f32 0.5, %v2779_v13 }
 0x2b8   :  { %v2168_v15 = vadd.f32 %v2160_v46, %v2152_v10 }
 0x2ba   :  { %2790 = vtanh.f32 %v2168_v15  ;;  %2202 = vst [vmem:[#allocation9 + $0x78] sm:$0xff] %v2168_v15 }
 0x2bb   :  { %v2783_v18 = vpop.eup %2782 }
 0x2bc   :  { %2864 = shalt.err (!%p2861_p5)
}
 0x2bd   :  { %2226 = dma.vmem_to_hbm [thread:$0]  %s2221_s13, 2048, %s3133_s5, [#allocation10], %s2903_s23, %s2903_s23, %s2904_s24   ;;  %v2178_v19 = vmul.f32 %v2783_v18, %v2121_v17  ;;  %v2785_v38 = vpop.eup %2784  ;;  %v2123_v21 = vadd.f32 0.5, %v2099_v0  ;;  %v2101_v23 = vmul.f32 0.5, %v2781_v16 }
 0x2be   :  { %v2103_v27 = vmul.f32 0.5, %v2785_v38  ;;  %s2910_s17 = smov [#allocation8]  }
 0x2bf   :  { %2187 = vst [vmem:[#allocation8 + $0x48] sm:$0xff] %v2178_v19  ;;  %v2787_v24 = vpop.eup %2786  ;;  %v2125_v25 = vadd.f32 0.5, %v2101_v23  ;;  %s2208_s18 = sshll.u32 %s2910_s17, 4  ;;  %s2209_s18 = int_to_ptr.vmem [resolvable:$true] %s2208_s18 }
 0x2c0   :  { %v2180_v14 = vmul.f32 %v2787_v24, %v2123_v21  ;;  %v2127_v31 = vadd.f32 0.5, %v2103_v27  ;;  %s2873_s5 = scalar_lea.vmem %s2209_s18, 2048  ;;  %p2878_p7 = scmp.lt.s32.totalorder %s2209_s18, %s2209_s18 }
 0x2c1   :  { %p2874_p6 = scmp.ne.s32.totalorder %s2209_s18, %s2873_s5  ;;  %p2879_p8 = scmp.lt.s32.totalorder %s2873_s5, %s2873_s5 }
 0x2c2   :  { %2189 = vst [vmem:[#allocation8 + $0x58] sm:$0xff] %v2180_v14 }
 0x2c3   :  { %v2789_v29 = vpop.eup %2788  ;;  %p2880_p9 = por %p2879_p8, %p2878_p7 }
 0x2c4   :  { %v2182_v30 = vmul.f32 %v2789_v29, %v2125_v25 }
 0x2c5   :  { %p2881_p10 = pnand %p2880_p9, %p2874_p6 }
 0x2c6   :  { %2191 = vst [vmem:[#allocation8 + $0x68] sm:$0xff] %v2182_v30 }
 0x2c7   :  { %v2791_v32 = vpop.eup %2790 }
 0x2c8   :  { %v2184_v33 = vmul.f32 %v2791_v32, %v2127_v31 }
 0x2ca   :  { %2193 = vst [vmem:[#allocation8 + $0x78] sm:$0xff] %v2184_v33 }
 0x2cb   :  { %2884 = shalt.err (!%p2881_p10)
}
 0x2cc   :  { %2214 = dma.vmem_to_hbm [thread:$0]  %s2209_s18, 2048, %s3132_s4, [#allocation4], %s2903_s23, %s2903_s23, %s2904_s24  }
 0x2cd   :  { %2897 = dma.done.wait [#allocation4], 2048  }
 0x2ce   :  { %2898 = vsyncadd [#allocation4], 4294965248 }
 0x2cf   :  { %2899 = dma.done.wait [#allocation10], 2048  }
 0x2d0   :  { %2900 = vsyncadd [#allocation10], 4294965248 }
 0x2d1   :  { %2233 = vsyncpa [#allocation3], 1 }
 0x2d2   :  { %2234 = vsyncpa [#allocation6], 1 }
 0x2d3   :  { %2235 = vsyncpa [#allocation4], 1 }
 0x2d4   :  { %2236 = vsyncpa [#allocation10], 1 }

</bundles_post_ra>
